<compile_context>
chip_gen: v7x
topology: tpu7x:2x2x1
jax: 0.10.0
libtpu: 0.0.40
codegen_flags: <defaults>
</compile_context>

<pallas_src>
import jax
import jax.numpy as jnp
from jax import lax
from jax.experimental import pallas as pl
from jax.experimental.pallas import tpu as pltpu

INPUT_SIZE = 40
HIDDEN = 40
NUM_LAYERS = 4

HP = 128           # per-gate lane padding
GP = 3 * HP        # padded gate width (r | z | n), each 128-lane aligned
BP = 8             # batch padded to one full sublane tile


def gru_layer_kernel(x_ref, wih_ref, whh_ref, bgi_ref, bhn_ref, out_ref,
                     y_ref, gi_ref):
    """One GRU layer per grid step; all S timesteps unrolled inside.

    x_ref   : (S, BP, HP)    padded time-major inputs (same block every layer)
    wih_ref : (1, HP, 3*HP)  this layer's input->gates weights (W^T, gate-padded)
    whh_ref : (1, HP, 3*HP)  this layer's hidden->gates weights
    bgi_ref : (1, 1, 3*HP)   b_ih (all gates) + b_hh (r,z) folded
    bhn_ref : (1, 1, HP)     b_hh 'new'-gate bias (stays inside r*(...))
    out_ref : (BP, HP)       final hidden of the last layer (written once)
    y_ref   : (S, BP, HP)    VMEM scratch: inter-layer activations (persists)
    gi_ref  : (S, BP, 3*HP)  VMEM scratch: per-layer input projection
    """
    l = pl.program_id(0)
    last = pl.num_programs(0) - 1
    S, BPd, HPd = y_ref.shape
    GPd = gi_ref.shape[2]

    # Layer 0 reads the external input; later layers read the previous layer's
    # outputs already sitting in y_ref.
    @pl.when(l == 0)
    def _():
        y_ref[...] = x_ref[...]

    # ---- whole-sequence input projection (off the serial chain) ----
    seq = y_ref[...].reshape(S * BPd, HPd)
    gi = jnp.dot(seq, wih_ref[0], preferred_element_type=jnp.float32) + bgi_ref[0]
    gi_ref[...] = gi.reshape(S, BPd, GPd)       # bound live range; tile-aligned loads below

    # Hoisted (1,HP) -> (BP,HP) broadcast of the 'new'-gate hidden bias.
    b_hn = jnp.broadcast_to(bhn_ref[0], (BPd, HPd))

    # ---- t = 0 : h_0 == 0  =>  gh == 0, skip the recurrent matmul ----
    gi0 = gi_ref[0]                              # (BP, 3*HP), aligned tile load
    rz = jax.nn.sigmoid(gi0[:, :2 * HPd])
    r = rz[:, :HPd]
    z = rz[:, HPd:]
    n = jnp.tanh(gi0[:, 2 * HPd:] + r * b_hn)
    h = (1.0 - z) * n                            # z * h_0 == 0
    y_ref[0] = h

    # ---- t = 1 .. S-1 : serial recurrence (fully unrolled, S static) ----
    for t in range(1, S):
        # Index the ref inside the dot so W_hh streams from VMEM each step
        # (spare vld slots) instead of pinning ~48 weight vregs.
        gh = jnp.dot(h, whh_ref[0], preferred_element_type=jnp.float32)  # (BP, 3*HP)
        gi_t = gi_ref[t]                                                  # aligned tile load

        # one sigmoid over the contiguous [r | z] lanes (128-aligned slices)
        rz = jax.nn.sigmoid(gi_t[:, :2 * HPd] + gh[:, :2 * HPd])
        r = rz[:, :HPd]
        z = rz[:, HPd:]
        n = jnp.tanh(gi_t[:, 2 * HPd:] + r * (gh[:, 2 * HPd:] + b_hn))
        h = (1.0 - z) * n + z * h                # pad lanes of real rows stay exactly 0
        y_ref[t] = h                             # (8,128) aligned store

    @pl.when(l == last)
    def _():
        out_ref[...] = h


def pack_params(params):
    """Pre-pack torch-layout GRU params into the gate-padded kernel layout (once)."""
    wih_l, whh_l, bgi_l, bhn_l = [], [], [], []
    for (w_ih, w_hh, b_ih, b_hh) in params:
        in_dim = w_ih.shape[1]
        wih_t = w_ih.T                                   # (in,  3H)
        whh_t = w_hh.T                                   # (H,   3H)
        wih_p = jnp.zeros((HP, GP), jnp.float32)
        whh_p = jnp.zeros((HP, GP), jnp.float32)
        bgi = jnp.zeros((1, GP), jnp.float32)
        for g in range(3):
            src = slice(g * HIDDEN, (g + 1) * HIDDEN)
            dst = slice(g * HP, g * HP + HIDDEN)
            wih_p = wih_p.at[:in_dim, dst].set(wih_t[:, src])
            whh_p = whh_p.at[:HIDDEN, dst].set(whh_t[:, src])
            bgi = bgi.at[0, dst].set(b_ih[src])
        for g in range(2):                               # fold b_hh's r,z parts into gi bias
            src = slice(g * HIDDEN, (g + 1) * HIDDEN)
            dst = slice(g * HP, g * HP + HIDDEN)
            bgi = bgi.at[0, dst].add(b_hh[src])
        bhn = jnp.zeros((1, HP), jnp.float32).at[0, :HIDDEN].set(b_hh[2 * HIDDEN:])

        # Guard the pad-lane-zero invariant the kernel relies on.
        for g in range(3):
            pad = slice(g * HP + HIDDEN, (g + 1) * HP)
            assert not bool(jnp.any(wih_p[:, pad])), "w_ih pad lanes must be zero"
            assert not bool(jnp.any(whh_p[:, pad])), "w_hh pad lanes must be zero"
            assert not bool(jnp.any(bgi[0, pad])), "bgi pad lanes must be zero"
        assert not bool(jnp.any(wih_p[in_dim:, :])), "w_ih pad rows must be zero"
        assert not bool(jnp.any(whh_p[HIDDEN:, :])), "w_hh pad rows must be zero"
        assert not bool(jnp.any(bhn[0, HIDDEN:])), "b_hn pad lanes must be zero"

        wih_l.append(wih_p)
        whh_l.append(whh_p)
        bgi_l.append(bgi)
        bhn_l.append(bhn)
    return (jnp.stack(wih_l), jnp.stack(whh_l),
            jnp.stack(bgi_l), jnp.stack(bhn_l))


@jax.jit
def net_forward(x, packed):
    """x: (B, S, 40) batch_first, like the torch module. Returns (B, 40)."""
    wih, whh, bgi, bhn = packed
    B, S, _ = x.shape

    # time-major, pad batch to the 8-sublane tile and features to 128 lanes
    x_tm = jnp.transpose(x, (1, 0, 2))                                 # (S, B, 40)
    x_p = jnp.zeros((S, BP, HP), jnp.float32).at[:, :B, :INPUT_SIZE].set(x_tm)

    out = pl.pallas_call(
        gru_layer_kernel,
        out_shape=jax.ShapeDtypeStruct((BP, HP), jnp.float32),
        grid_spec=pltpu.PrefetchScalarGridSpec(
            num_scalar_prefetch=0,
            grid=(NUM_LAYERS,),
            in_specs=[
                pl.BlockSpec((S, BP, HP), lambda l: (0, 0, 0)),   # input: same block every layer
                pl.BlockSpec((1, HP, GP), lambda l: (l, 0, 0)),   # W_ih^T  (per-layer, pipelined)
                pl.BlockSpec((1, HP, GP), lambda l: (l, 0, 0)),   # W_hh^T
                pl.BlockSpec((1, 1, GP), lambda l: (l, 0, 0)),    # folded gi bias
                pl.BlockSpec((1, 1, HP), lambda l: (l, 0, 0)),    # b_hn
            ],
            out_specs=pl.BlockSpec((BP, HP), lambda l: (0, 0)),   # resident; written at l==L-1
            scratch_shapes=[
                pltpu.VMEM((S, BP, HP), jnp.float32),             # inter-layer activations
                pltpu.VMEM((S, BP, GP), jnp.float32),             # per-layer gi staging
            ],
        ),
        compiler_params=pltpu.CompilerParams(
            dimension_semantics=("arbitrary",)),
    )(x_p, wih, whh, bgi, bhn)

    # For a unidirectional GRU, last-layer output at the final time step == h_n[-1].
    return out[:B, :HIDDEN]


def init_params(key):
    """Deterministic init mirroring torch.nn.GRU's U(-1/sqrt(H), 1/sqrt(H))."""
    params = []
    bound = 1.0 / float(jnp.sqrt(jnp.float32(HIDDEN)))
    for layer in range(NUM_LAYERS):
        key, k1, k2, k3, k4 = jax.random.split(key, 5)
        in_size = INPUT_SIZE if layer == 0 else HIDDEN
        w_ih = jax.random.uniform(k1, (3 * HIDDEN, in_size), jnp.float32, -bound, bound)
        w_hh = jax.random.uniform(k2, (3 * HIDDEN, HIDDEN), jnp.float32, -bound, bound)
        b_ih = jax.random.uniform(k3, (3 * HIDDEN,), jnp.float32, -bound, bound)
        b_hh = jax.random.uniform(k4, (3 * HIDDEN,), jnp.float32, -bound, bound)
        params.append((w_ih, w_hh, b_ih, b_hh))
    return params


def gru_reference(x, params):
    """Pure-JAX reference (same math as torch.nn.GRU, lax.scan) for verification."""
    x_tm = jnp.transpose(x, (1, 0, 2))
    H = HIDDEN
    for (w_ih, w_hh, b_ih, b_hh) in params:
        def step(h, x_t):
            gi = x_t @ w_ih.T + b_ih
            gh = h @ w_hh.T + b_hh
            r = jax.nn.sigmoid(gi[:, :H] + gh[:, :H])
            z = jax.nn.sigmoid(gi[:, H:2 * H] + gh[:, H:2 * H])
            n = jnp.tanh(gi[:, 2 * H:] + r * gh[:, 2 * H:])
            h_new = (1.0 - z) * n + z * h
            return h_new, h_new
        h0 = jnp.zeros((x_tm.shape[1], H), jnp.float32)
        _, x_tm = lax.scan(step, h0, x_tm)
    return x_tm[-1]


if __name__ == "__main__":
    key = jax.random.PRNGKey(0)
    k_params, k_x = jax.random.split(key)

    params = init_params(k_params)
    packed = pack_params(params)     # one-time gate-padded weight packing (outside jit)

    B, S = 2, 8
    x = jax.random.normal(k_x, (B, S, INPUT_SIZE), dtype=jnp.float32)

    out = net_forward(x, packed)
    out = jax.block_until_ready(out)
    assert out.shape == (B, HIDDEN), out.shape

    ref = gru_reference(x, params)
    assert jnp.allclose(out, ref, atol=1e-3, rtol=1e-3), (
        float(jnp.max(jnp.abs(out - ref))))

    print("KERNEL_OK")
</pallas_src>

<mosaic_0001>
module attributes {stable_mosaic.version = 11 : i64} {
  func.func @gru_layer_kernel(%arg0: i32, %arg1: memref<8x8x128xf32, #tpu.memory_space<vmem>>, %arg2: memref<1x128x384xf32, #tpu.memory_space<vmem>>, %arg3: memref<1x128x384xf32, #tpu.memory_space<vmem>>, %arg4: memref<1x1x384xf32, #tpu.memory_space<vmem>>, %arg5: memref<1x1x128xf32, #tpu.memory_space<vmem>>, %arg6: memref<8x128xf32, #tpu.memory_space<vmem>>, %arg7: memref<8x8x128xf32, #tpu.memory_space<vmem>>, %arg8: memref<8x8x384xf32, #tpu.memory_space<vmem>>) attributes {dimension_semantics = [#tpu.dimension_semantics<arbitrary>], iteration_bounds = array<i64: 4>, scalar_prefetch = 0 : i64, scratch_operands = 2 : i64, tpu.core_type = #tpu.core_type<tc>, window_params = [{pipeline_mode = #tpu.pipeline_mode<synchronous>, transform_indices = @transform_0, window_bounds = array<i64: 8, 8, 128>}, {transform_indices = @transform_1, window_bounds = array<i64: 1, 128, 384>}, {transform_indices = @transform_2, window_bounds = array<i64: 1, 128, 384>}, {transform_indices = @transform_3, window_bounds = array<i64: 1, 1, 384>}, {transform_indices = @transform_4, window_bounds = array<i64: 1, 1, 128>}, {pipeline_mode = #tpu.pipeline_mode<synchronous>, transform_indices = @transform_5, window_bounds = array<i64: 8, 128>}]} {
    %c0_i32 = arith.constant 0 : i32
    %0 = arith.cmpi eq, %arg0, %c0_i32 : i32
    %1 = arith.extui %0 : i1 to i32
    %c0_i32_0 = arith.constant 0 : i32
    %2 = arith.cmpi ne, %1, %c0_i32_0 : i32
    scf.if %2 {
      %c0_101 = arith.constant 0 : index
      %c0_102 = arith.constant 0 : index
      %c0_103 = arith.constant 0 : index
      %244 = vector.load %arg1[%c0_101, %c0_102, %c0_103] : memref<8x8x128xf32, #tpu.memory_space<vmem>>, vector<8x8x128xf32>
      %c0_104 = arith.constant 0 : index
      %c0_105 = arith.constant 0 : index
      %c0_106 = arith.constant 0 : index
      %245 = vector.load %arg7[%c0_104, %c0_105, %c0_106] : memref<8x8x128xf32, #tpu.memory_space<vmem>>, vector<8x8x128xf32>
      tpu.vector_store %arg7[%c0_104, %c0_105, %c0_106], %244 {strides = array<i32>} : memref<8x8x128xf32, #tpu.memory_space<vmem>>, vector<8x8x128xf32>,
    } else {
    }
    %c0 = arith.constant 0 : index
    %c0_1 = arith.constant 0 : index
    %c0_2 = arith.constant 0 : index
    %3 = vector.load %arg7[%c0, %c0_1, %c0_2] : memref<8x8x128xf32, #tpu.memory_space<vmem>>, vector<8x8x128xf32>
    %4 = vector.shape_cast %3 : vector<8x8x128xf32> to vector<64x128xf32>
    %c0_3 = arith.constant 0 : index
    %c0_4 = arith.constant 0 : index
    %c0_5 = arith.constant 0 : index
    %5 = vector.load %arg2[%c0_3, %c0_4, %c0_5] : memref<1x128x384xf32, #tpu.memory_space<vmem>>, vector<1x128x384xf32>
    %6 = vector.shape_cast %5 : vector<1x128x384xf32> to vector<128x384xf32>
    %cst = arith.constant dense<0.000000e+00> : vector<64x384xf32>
    %7 = tpu.matmul %4, %6, %cst {dimension_numbers = #tpu.dot_dimension_numbers<[1], [0], [0], [1], [0, 0, 1, 1], [], []>} : vector<64x128xf32>, vector<128x384xf32>, vector<64x384xf32> -> vector<64x384xf32>
    %c0_6 = arith.constant 0 : index
    %c0_7 = arith.constant 0 : index
    %c0_8 = arith.constant 0 : index
    %8 = vector.load %arg4[%c0_6, %c0_7, %c0_8] : memref<1x1x384xf32, #tpu.memory_space<vmem>>, vector<1x1x384xf32>
    %9 = vector.shape_cast %8 : vector<1x1x384xf32> to vector<1x384xf32>
    %10 = vector.broadcast %9 : vector<1x384xf32> to vector<64x384xf32>
    %11 = arith.addf %7, %10 : vector<64x384xf32>
    %12 = vector.shape_cast %11 : vector<64x384xf32> to vector<8x8x384xf32>
    %c0_9 = arith.constant 0 : index
    %c0_10 = arith.constant 0 : index
    %c0_11 = arith.constant 0 : index
    %13 = vector.load %arg8[%c0_9, %c0_10, %c0_11] : memref<8x8x384xf32, #tpu.memory_space<vmem>>, vector<8x8x384xf32>
    tpu.vector_store %arg8[%c0_9, %c0_10, %c0_11], %12 {strides = array<i32>} : memref<8x8x384xf32, #tpu.memory_space<vmem>>, vector<8x8x384xf32>,
    %c0_12 = arith.constant 0 : index
    %c0_13 = arith.constant 0 : index
    %c0_14 = arith.constant 0 : index
    %14 = vector.load %arg5[%c0_12, %c0_13, %c0_14] : memref<1x1x128xf32, #tpu.memory_space<vmem>>, vector<1x1x128xf32>
    %15 = vector.shape_cast %14 : vector<1x1x128xf32> to vector<1x128xf32>
    %16 = vector.shape_cast %15 : vector<1x128xf32> to vector<1x128xf32>
    %17 = vector.broadcast %16 : vector<1x128xf32> to vector<8x128xf32>
    %c0_15 = arith.constant 0 : index
    %c0_16 = arith.constant 0 : index
    %c0_17 = arith.constant 0 : index
    %18 = vector.load %arg8[%c0_15, %c0_16, %c0_17] : memref<8x8x384xf32, #tpu.memory_space<vmem>>, vector<1x8x384xf32>
    %19 = vector.shape_cast %18 : vector<1x8x384xf32> to vector<8x384xf32>
    %20 = vector.extract_strided_slice %19 {offsets = [0, 0], sizes = [8, 256], strides = [1, 1]} : vector<8x384xf32> to vector<8x256xf32>
    %21 = arith.negf %20 : vector<8x256xf32>
    %22 = math.exp %21 : vector<8x256xf32>
    %cst_18 = arith.constant 1.000000e+00 : f32
    %23 = vector.broadcast %cst_18 : f32 to vector<8x256xf32>
    %24 = arith.addf %23, %22 : vector<8x256xf32>
    %25 = arith.divf %23, %24 : vector<8x256xf32>
    %26 = vector.extract_strided_slice %25 {offsets = [0, 0], sizes = [8, 128], strides = [1, 1]} : vector<8x256xf32> to vector<8x128xf32>
    %27 = vector.extract_strided_slice %25 {offsets = [0, 128], sizes = [8, 128], strides = [1, 1]} : vector<8x256xf32> to vector<8x128xf32>
    %28 = vector.extract_strided_slice %19 {offsets = [0, 256], sizes = [8, 128], strides = [1, 1]} : vector<8x384xf32> to vector<8x128xf32>
    %29 = arith.mulf %26, %17 : vector<8x128xf32>
    %30 = arith.addf %28, %29 : vector<8x128xf32>
    %31 = math.tanh %30 : vector<8x128xf32>
    %cst_19 = arith.constant 1.000000e+00 : f32
    %32 = vector.broadcast %cst_19 : f32 to vector<8x128xf32>
    %33 = arith.subf %32, %27 : vector<8x128xf32>
    %34 = arith.mulf %33, %31 : vector<8x128xf32>
    %c0_20 = arith.constant 0 : index
    %c0_21 = arith.constant 0 : index
    %c0_22 = arith.constant 0 : index
    %35 = vector.load %arg7[%c0_20, %c0_21, %c0_22] : memref<8x8x128xf32, #tpu.memory_space<vmem>>, vector<1x8x128xf32>
    %36 = vector.shape_cast %35 : vector<1x8x128xf32> to vector<8x128xf32>
    %37 = vector.shape_cast %34 : vector<8x128xf32> to vector<1x8x128xf32>
    tpu.vector_store %arg7[%c0_20, %c0_21, %c0_22], %37 {strides = array<i32>} : memref<8x8x128xf32, #tpu.memory_space<vmem>>, vector<1x8x128xf32>,
    %c0_23 = arith.constant 0 : index
    %c0_24 = arith.constant 0 : index
    %c0_25 = arith.constant 0 : index
    %38 = vector.load %arg3[%c0_23, %c0_24, %c0_25] : memref<1x128x384xf32, #tpu.memory_space<vmem>>, vector<1x128x384xf32>
    %39 = vector.shape_cast %38 : vector<1x128x384xf32> to vector<128x384xf32>
    %cst_26 = arith.constant dense<0.000000e+00> : vector<8x384xf32>
    %40 = tpu.matmul %34, %39, %cst_26 {dimension_numbers = #tpu.dot_dimension_numbers<[1], [0], [0], [1], [0, 0, 1, 1], [], []>} : vector<8x128xf32>, vector<128x384xf32>, vector<8x384xf32> -> vector<8x384xf32>
    %c1 = arith.constant 1 : index
    %c0_27 = arith.constant 0 : index
    %c0_28 = arith.constant 0 : index
    %41 = vector.load %arg8[%c1, %c0_27, %c0_28] : memref<8x8x384xf32, #tpu.memory_space<vmem>>, vector<1x8x384xf32>
    %42 = vector.shape_cast %41 : vector<1x8x384xf32> to vector<8x384xf32>
    %43 = vector.extract_strided_slice %42 {offsets = [0, 0], sizes = [8, 256], strides = [1, 1]} : vector<8x384xf32> to vector<8x256xf32>
    %44 = vector.extract_strided_slice %40 {offsets = [0, 0], sizes = [8, 256], strides = [1, 1]} : vector<8x384xf32> to vector<8x256xf32>
    %45 = arith.addf %43, %44 : vector<8x256xf32>
    %46 = arith.negf %45 : vector<8x256xf32>
    %47 = math.exp %46 : vector<8x256xf32>
    %cst_29 = arith.constant 1.000000e+00 : f32
    %48 = vector.broadcast %cst_29 : f32 to vector<8x256xf32>
    %49 = arith.addf %48, %47 : vector<8x256xf32>
    %50 = arith.divf %48, %49 : vector<8x256xf32>
    %51 = vector.extract_strided_slice %50 {offsets = [0, 0], sizes = [8, 128], strides = [1, 1]} : vector<8x256xf32> to vector<8x128xf32>
    %52 = vector.extract_strided_slice %50 {offsets = [0, 128], sizes = [8, 128], strides = [1, 1]} : vector<8x256xf32> to vector<8x128xf32>
    %53 = vector.extract_strided_slice %42 {offsets = [0, 256], sizes = [8, 128], strides = [1, 1]} : vector<8x384xf32> to vector<8x128xf32>
    %54 = vector.extract_strided_slice %40 {offsets = [0, 256], sizes = [8, 128], strides = [1, 1]} : vector<8x384xf32> to vector<8x128xf32>
    %55 = arith.addf %54, %17 : vector<8x128xf32>
    %56 = arith.mulf %51, %55 : vector<8x128xf32>
    %57 = arith.addf %53, %56 : vector<8x128xf32>
    %58 = math.tanh %57 : vector<8x128xf32>
    %cst_30 = arith.constant 1.000000e+00 : f32
    %59 = vector.broadcast %cst_30 : f32 to vector<8x128xf32>
    %60 = arith.subf %59, %52 : vector<8x128xf32>
    %61 = arith.mulf %60, %58 : vector<8x128xf32>
    %62 = arith.mulf %52, %34 : vector<8x128xf32>
    %63 = arith.addf %61, %62 : vector<8x128xf32>
    %c1_31 = arith.constant 1 : index
    %c0_32 = arith.constant 0 : index
    %c0_33 = arith.constant 0 : index
    %64 = vector.load %arg7[%c1_31, %c0_32, %c0_33] : memref<8x8x128xf32, #tpu.memory_space<vmem>>, vector<1x8x128xf32>
    %65 = vector.shape_cast %64 : vector<1x8x128xf32> to vector<8x128xf32>
    %66 = vector.shape_cast %63 : vector<8x128xf32> to vector<1x8x128xf32>
    tpu.vector_store %arg7[%c1_31, %c0_32, %c0_33], %66 {strides = array<i32>} : memref<8x8x128xf32, #tpu.memory_space<vmem>>, vector<1x8x128xf32>,
    %c0_34 = arith.constant 0 : index
    %c0_35 = arith.constant 0 : index
    %c0_36 = arith.constant 0 : index
    %67 = vector.load %arg3[%c0_34, %c0_35, %c0_36] : memref<1x128x384xf32, #tpu.memory_space<vmem>>, vector<1x128x384xf32>
    %68 = vector.shape_cast %67 : vector<1x128x384xf32> to vector<128x384xf32>
    %cst_37 = arith.constant dense<0.000000e+00> : vector<8x384xf32>
    %69 = tpu.matmul %63, %68, %cst_37 {dimension_numbers = #tpu.dot_dimension_numbers<[1], [0], [0], [1], [0, 0, 1, 1], [], []>} : vector<8x128xf32>, vector<128x384xf32>, vector<8x384xf32> -> vector<8x384xf32>
    %c2 = arith.constant 2 : index
    %c0_38 = arith.constant 0 : index
    %c0_39 = arith.constant 0 : index
    %70 = vector.load %arg8[%c2, %c0_38, %c0_39] : memref<8x8x384xf32, #tpu.memory_space<vmem>>, vector<1x8x384xf32>
    %71 = vector.shape_cast %70 : vector<1x8x384xf32> to vector<8x384xf32>
    %72 = vector.extract_strided_slice %71 {offsets = [0, 0], sizes = [8, 256], strides = [1, 1]} : vector<8x384xf32> to vector<8x256xf32>
    %73 = vector.extract_strided_slice %69 {offsets = [0, 0], sizes = [8, 256], strides = [1, 1]} : vector<8x384xf32> to vector<8x256xf32>
    %74 = arith.addf %72, %73 : vector<8x256xf32>
    %75 = arith.negf %74 : vector<8x256xf32>
    %76 = math.exp %75 : vector<8x256xf32>
    %cst_40 = arith.constant 1.000000e+00 : f32
    %77 = vector.broadcast %cst_40 : f32 to vector<8x256xf32>
    %78 = arith.addf %77, %76 : vector<8x256xf32>
    %79 = arith.divf %77, %78 : vector<8x256xf32>
    %80 = vector.extract_strided_slice %79 {offsets = [0, 0], sizes = [8, 128], strides = [1, 1]} : vector<8x256xf32> to vector<8x128xf32>
    %81 = vector.extract_strided_slice %79 {offsets = [0, 128], sizes = [8, 128], strides = [1, 1]} : vector<8x256xf32> to vector<8x128xf32>
    %82 = vector.extract_strided_slice %71 {offsets = [0, 256], sizes = [8, 128], strides = [1, 1]} : vector<8x384xf32> to vector<8x128xf32>
    %83 = vector.extract_strided_slice %69 {offsets = [0, 256], sizes = [8, 128], strides = [1, 1]} : vector<8x384xf32> to vector<8x128xf32>
    %84 = arith.addf %83, %17 : vector<8x128xf32>
    %85 = arith.mulf %80, %84 : vector<8x128xf32>
    %86 = arith.addf %82, %85 : vector<8x128xf32>
    %87 = math.tanh %86 : vector<8x128xf32>
    %cst_41 = arith.constant 1.000000e+00 : f32
    %88 = vector.broadcast %cst_41 : f32 to vector<8x128xf32>
    %89 = arith.subf %88, %81 : vector<8x128xf32>
    %90 = arith.mulf %89, %87 : vector<8x128xf32>
    %91 = arith.mulf %81, %63 : vector<8x128xf32>
    %92 = arith.addf %90, %91 : vector<8x128xf32>
    %c2_42 = arith.constant 2 : index
    %c0_43 = arith.constant 0 : index
    %c0_44 = arith.constant 0 : index
    %93 = vector.load %arg7[%c2_42, %c0_43, %c0_44] : memref<8x8x128xf32, #tpu.memory_space<vmem>>, vector<1x8x128xf32>
    %94 = vector.shape_cast %93 : vector<1x8x128xf32> to vector<8x128xf32>
    %95 = vector.shape_cast %92 : vector<8x128xf32> to vector<1x8x128xf32>
    tpu.vector_store %arg7[%c2_42, %c0_43, %c0_44], %95 {strides = array<i32>} : memref<8x8x128xf32, #tpu.memory_space<vmem>>, vector<1x8x128xf32>,
    %c0_45 = arith.constant 0 : index
    %c0_46 = arith.constant 0 : index
    %c0_47 = arith.constant 0 : index
    %96 = vector.load %arg3[%c0_45, %c0_46, %c0_47] : memref<1x128x384xf32, #tpu.memory_space<vmem>>, vector<1x128x384xf32>
    %97 = vector.shape_cast %96 : vector<1x128x384xf32> to vector<128x384xf32>
    %cst_48 = arith.constant dense<0.000000e+00> : vector<8x384xf32>
    %98 = tpu.matmul %92, %97, %cst_48 {dimension_numbers = #tpu.dot_dimension_numbers<[1], [0], [0], [1], [0, 0, 1, 1], [], []>} : vector<8x128xf32>, vector<128x384xf32>, vector<8x384xf32> -> vector<8x384xf32>
    %c3 = arith.constant 3 : index
    %c0_49 = arith.constant 0 : index
    %c0_50 = arith.constant 0 : index
    %99 = vector.load %arg8[%c3, %c0_49, %c0_50] : memref<8x8x384xf32, #tpu.memory_space<vmem>>, vector<1x8x384xf32>
    %100 = vector.shape_cast %99 : vector<1x8x384xf32> to vector<8x384xf32>
    %101 = vector.extract_strided_slice %100 {offsets = [0, 0], sizes = [8, 256], strides = [1, 1]} : vector<8x384xf32> to vector<8x256xf32>
    %102 = vector.extract_strided_slice %98 {offsets = [0, 0], sizes = [8, 256], strides = [1, 1]} : vector<8x384xf32> to vector<8x256xf32>
    %103 = arith.addf %101, %102 : vector<8x256xf32>
    %104 = arith.negf %103 : vector<8x256xf32>
    %105 = math.exp %104 : vector<8x256xf32>
    %cst_51 = arith.constant 1.000000e+00 : f32
    %106 = vector.broadcast %cst_51 : f32 to vector<8x256xf32>
    %107 = arith.addf %106, %105 : vector<8x256xf32>
    %108 = arith.divf %106, %107 : vector<8x256xf32>
    %109 = vector.extract_strided_slice %108 {offsets = [0, 0], sizes = [8, 128], strides = [1, 1]} : vector<8x256xf32> to vector<8x128xf32>
    %110 = vector.extract_strided_slice %108 {offsets = [0, 128], sizes = [8, 128], strides = [1, 1]} : vector<8x256xf32> to vector<8x128xf32>
    %111 = vector.extract_strided_slice %100 {offsets = [0, 256], sizes = [8, 128], strides = [1, 1]} : vector<8x384xf32> to vector<8x128xf32>
    %112 = vector.extract_strided_slice %98 {offsets = [0, 256], sizes = [8, 128], strides = [1, 1]} : vector<8x384xf32> to vector<8x128xf32>
    %113 = arith.addf %112, %17 : vector<8x128xf32>
    %114 = arith.mulf %109, %113 : vector<8x128xf32>
    %115 = arith.addf %111, %114 : vector<8x128xf32>
    %116 = math.tanh %115 : vector<8x128xf32>
    %cst_52 = arith.constant 1.000000e+00 : f32
    %117 = vector.broadcast %cst_52 : f32 to vector<8x128xf32>
    %118 = arith.subf %117, %110 : vector<8x128xf32>
    %119 = arith.mulf %118, %116 : vector<8x128xf32>
    %120 = arith.mulf %110, %92 : vector<8x128xf32>
    %121 = arith.addf %119, %120 : vector<8x128xf32>
    %c3_53 = arith.constant 3 : index
    %c0_54 = arith.constant 0 : index
    %c0_55 = arith.constant 0 : index
    %122 = vector.load %arg7[%c3_53, %c0_54, %c0_55] : memref<8x8x128xf32, #tpu.memory_space<vmem>>, vector<1x8x128xf32>
    %123 = vector.shape_cast %122 : vector<1x8x128xf32> to vector<8x128xf32>
    %124 = vector.shape_cast %121 : vector<8x128xf32> to vector<1x8x128xf32>
    tpu.vector_store %arg7[%c3_53, %c0_54, %c0_55], %124 {strides = array<i32>} : memref<8x8x128xf32, #tpu.memory_space<vmem>>, vector<1x8x128xf32>,
    %c0_56 = arith.constant 0 : index
    %c0_57 = arith.constant 0 : index
    %c0_58 = arith.constant 0 : index
    %125 = vector.load %arg3[%c0_56, %c0_57, %c0_58] : memref<1x128x384xf32, #tpu.memory_space<vmem>>, vector<1x128x384xf32>
    %126 = vector.shape_cast %125 : vector<1x128x384xf32> to vector<128x384xf32>
    %cst_59 = arith.constant dense<0.000000e+00> : vector<8x384xf32>
    %127 = tpu.matmul %121, %126, %cst_59 {dimension_numbers = #tpu.dot_dimension_numbers<[1], [0], [0], [1], [0, 0, 1, 1], [], []>} : vector<8x128xf32>, vector<128x384xf32>, vector<8x384xf32> -> vector<8x384xf32>
    %c4 = arith.constant 4 : index
    %c0_60 = arith.constant 0 : index
    %c0_61 = arith.constant 0 : index
    %128 = vector.load %arg8[%c4, %c0_60, %c0_61] : memref<8x8x384xf32, #tpu.memory_space<vmem>>, vector<1x8x384xf32>
    %129 = vector.shape_cast %128 : vector<1x8x384xf32> to vector<8x384xf32>
    %130 = vector.extract_strided_slice %129 {offsets = [0, 0], sizes = [8, 256], strides = [1, 1]} : vector<8x384xf32> to vector<8x256xf32>
    %131 = vector.extract_strided_slice %127 {offsets = [0, 0], sizes = [8, 256], strides = [1, 1]} : vector<8x384xf32> to vector<8x256xf32>
    %132 = arith.addf %130, %131 : vector<8x256xf32>
    %133 = arith.negf %132 : vector<8x256xf32>
    %134 = math.exp %133 : vector<8x256xf32>
    %cst_62 = arith.constant 1.000000e+00 : f32
    %135 = vector.broadcast %cst_62 : f32 to vector<8x256xf32>
    %136 = arith.addf %135, %134 : vector<8x256xf32>
    %137 = arith.divf %135, %136 : vector<8x256xf32>
    %138 = vector.extract_strided_slice %137 {offsets = [0, 0], sizes = [8, 128], strides = [1, 1]} : vector<8x256xf32> to vector<8x128xf32>
    %139 = vector.extract_strided_slice %137 {offsets = [0, 128], sizes = [8, 128], strides = [1, 1]} : vector<8x256xf32> to vector<8x128xf32>
    %140 = vector.extract_strided_slice %129 {offsets = [0, 256], sizes = [8, 128], strides = [1, 1]} : vector<8x384xf32> to vector<8x128xf32>
    %141 = vector.extract_strided_slice %127 {offsets = [0, 256], sizes = [8, 128], strides = [1, 1]} : vector<8x384xf32> to vector<8x128xf32>
    %142 = arith.addf %141, %17 : vector<8x128xf32>
    %143 = arith.mulf %138, %142 : vector<8x128xf32>
    %144 = arith.addf %140, %143 : vector<8x128xf32>
    %145 = math.tanh %144 : vector<8x128xf32>
    %cst_63 = arith.constant 1.000000e+00 : f32
    %146 = vector.broadcast %cst_63 : f32 to vector<8x128xf32>
    %147 = arith.subf %146, %139 : vector<8x128xf32>
    %148 = arith.mulf %147, %145 : vector<8x128xf32>
    %149 = arith.mulf %139, %121 : vector<8x128xf32>
    %150 = arith.addf %148, %149 : vector<8x128xf32>
    %c4_64 = arith.constant 4 : index
    %c0_65 = arith.constant 0 : index
    %c0_66 = arith.constant 0 : index
    %151 = vector.load %arg7[%c4_64, %c0_65, %c0_66] : memref<8x8x128xf32, #tpu.memory_space<vmem>>, vector<1x8x128xf32>
    %152 = vector.shape_cast %151 : vector<1x8x128xf32> to vector<8x128xf32>
    %153 = vector.shape_cast %150 : vector<8x128xf32> to vector<1x8x128xf32>
    tpu.vector_store %arg7[%c4_64, %c0_65, %c0_66], %153 {strides = array<i32>} : memref<8x8x128xf32, #tpu.memory_space<vmem>>, vector<1x8x128xf32>,
    %c0_67 = arith.constant 0 : index
    %c0_68 = arith.constant 0 : index
    %c0_69 = arith.constant 0 : index
    %154 = vector.load %arg3[%c0_67, %c0_68, %c0_69] : memref<1x128x384xf32, #tpu.memory_space<vmem>>, vector<1x128x384xf32>
    %155 = vector.shape_cast %154 : vector<1x128x384xf32> to vector<128x384xf32>
    %cst_70 = arith.constant dense<0.000000e+00> : vector<8x384xf32>
    %156 = tpu.matmul %150, %155, %cst_70 {dimension_numbers = #tpu.dot_dimension_numbers<[1], [0], [0], [1], [0, 0, 1, 1], [], []>} : vector<8x128xf32>, vector<128x384xf32>, vector<8x384xf32> -> vector<8x384xf32>
    %c5 = arith.constant 5 : index
    %c0_71 = arith.constant 0 : index
    %c0_72 = arith.constant 0 : index
    %157 = vector.load %arg8[%c5, %c0_71, %c0_72] : memref<8x8x384xf32, #tpu.memory_space<vmem>>, vector<1x8x384xf32>
    %158 = vector.shape_cast %157 : vector<1x8x384xf32> to vector<8x384xf32>
    %159 = vector.extract_strided_slice %158 {offsets = [0, 0], sizes = [8, 256], strides = [1, 1]} : vector<8x384xf32> to vector<8x256xf32>
    %160 = vector.extract_strided_slice %156 {offsets = [0, 0], sizes = [8, 256], strides = [1, 1]} : vector<8x384xf32> to vector<8x256xf32>
    %161 = arith.addf %159, %160 : vector<8x256xf32>
    %162 = arith.negf %161 : vector<8x256xf32>
    %163 = math.exp %162 : vector<8x256xf32>
    %cst_73 = arith.constant 1.000000e+00 : f32
    %164 = vector.broadcast %cst_73 : f32 to vector<8x256xf32>
    %165 = arith.addf %164, %163 : vector<8x256xf32>
    %166 = arith.divf %164, %165 : vector<8x256xf32>
    %167 = vector.extract_strided_slice %166 {offsets = [0, 0], sizes = [8, 128], strides = [1, 1]} : vector<8x256xf32> to vector<8x128xf32>
    %168 = vector.extract_strided_slice %166 {offsets = [0, 128], sizes = [8, 128], strides = [1, 1]} : vector<8x256xf32> to vector<8x128xf32>
    %169 = vector.extract_strided_slice %158 {offsets = [0, 256], sizes = [8, 128], strides = [1, 1]} : vector<8x384xf32> to vector<8x128xf32>
    %170 = vector.extract_strided_slice %156 {offsets = [0, 256], sizes = [8, 128], strides = [1, 1]} : vector<8x384xf32> to vector<8x128xf32>
    %171 = arith.addf %170, %17 : vector<8x128xf32>
    %172 = arith.mulf %167, %171 : vector<8x128xf32>
    %173 = arith.addf %169, %172 : vector<8x128xf32>
    %174 = math.tanh %173 : vector<8x128xf32>
    %cst_74 = arith.constant 1.000000e+00 : f32
    %175 = vector.broadcast %cst_74 : f32 to vector<8x128xf32>
    %176 = arith.subf %175, %168 : vector<8x128xf32>
    %177 = arith.mulf %176, %174 : vector<8x128xf32>
    %178 = arith.mulf %168, %150 : vector<8x128xf32>
    %179 = arith.addf %177, %178 : vector<8x128xf32>
    %c5_75 = arith.constant 5 : index
    %c0_76 = arith.constant 0 : index
    %c0_77 = arith.constant 0 : index
    %180 = vector.load %arg7[%c5_75, %c0_76, %c0_77] : memref<8x8x128xf32, #tpu.memory_space<vmem>>, vector<1x8x128xf32>
    %181 = vector.shape_cast %180 : vector<1x8x128xf32> to vector<8x128xf32>
    %182 = vector.shape_cast %179 : vector<8x128xf32> to vector<1x8x128xf32>
    tpu.vector_store %arg7[%c5_75, %c0_76, %c0_77], %182 {strides = array<i32>} : memref<8x8x128xf32, #tpu.memory_space<vmem>>, vector<1x8x128xf32>,
    %c0_78 = arith.constant 0 : index
    %c0_79 = arith.constant 0 : index
    %c0_80 = arith.constant 0 : index
    %183 = vector.load %arg3[%c0_78, %c0_79, %c0_80] : memref<1x128x384xf32, #tpu.memory_space<vmem>>, vector<1x128x384xf32>
    %184 = vector.shape_cast %183 : vector<1x128x384xf32> to vector<128x384xf32>
    %cst_81 = arith.constant dense<0.000000e+00> : vector<8x384xf32>
    %185 = tpu.matmul %179, %184, %cst_81 {dimension_numbers = #tpu.dot_dimension_numbers<[1], [0], [0], [1], [0, 0, 1, 1], [], []>} : vector<8x128xf32>, vector<128x384xf32>, vector<8x384xf32> -> vector<8x384xf32>
    %c6 = arith.constant 6 : index
    %c0_82 = arith.constant 0 : index
    %c0_83 = arith.constant 0 : index
    %186 = vector.load %arg8[%c6, %c0_82, %c0_83] : memref<8x8x384xf32, #tpu.memory_space<vmem>>, vector<1x8x384xf32>
    %187 = vector.shape_cast %186 : vector<1x8x384xf32> to vector<8x384xf32>
    %188 = vector.extract_strided_slice %187 {offsets = [0, 0], sizes = [8, 256], strides = [1, 1]} : vector<8x384xf32> to vector<8x256xf32>
    %189 = vector.extract_strided_slice %185 {offsets = [0, 0], sizes = [8, 256], strides = [1, 1]} : vector<8x384xf32> to vector<8x256xf32>
    %190 = arith.addf %188, %189 : vector<8x256xf32>
    %191 = arith.negf %190 : vector<8x256xf32>
    %192 = math.exp %191 : vector<8x256xf32>
    %cst_84 = arith.constant 1.000000e+00 : f32
    %193 = vector.broadcast %cst_84 : f32 to vector<8x256xf32>
    %194 = arith.addf %193, %192 : vector<8x256xf32>
    %195 = arith.divf %193, %194 : vector<8x256xf32>
    %196 = vector.extract_strided_slice %195 {offsets = [0, 0], sizes = [8, 128], strides = [1, 1]} : vector<8x256xf32> to vector<8x128xf32>
    %197 = vector.extract_strided_slice %195 {offsets = [0, 128], sizes = [8, 128], strides = [1, 1]} : vector<8x256xf32> to vector<8x128xf32>
    %198 = vector.extract_strided_slice %187 {offsets = [0, 256], sizes = [8, 128], strides = [1, 1]} : vector<8x384xf32> to vector<8x128xf32>
    %199 = vector.extract_strided_slice %185 {offsets = [0, 256], sizes = [8, 128], strides = [1, 1]} : vector<8x384xf32> to vector<8x128xf32>
    %200 = arith.addf %199, %17 : vector<8x128xf32>
    %201 = arith.mulf %196, %200 : vector<8x128xf32>
    %202 = arith.addf %198, %201 : vector<8x128xf32>
    %203 = math.tanh %202 : vector<8x128xf32>
    %cst_85 = arith.constant 1.000000e+00 : f32
    %204 = vector.broadcast %cst_85 : f32 to vector<8x128xf32>
    %205 = arith.subf %204, %197 : vector<8x128xf32>
    %206 = arith.mulf %205, %203 : vector<8x128xf32>
    %207 = arith.mulf %197, %179 : vector<8x128xf32>
    %208 = arith.addf %206, %207 : vector<8x128xf32>
    %c6_86 = arith.constant 6 : index
    %c0_87 = arith.constant 0 : index
    %c0_88 = arith.constant 0 : index
    %209 = vector.load %arg7[%c6_86, %c0_87, %c0_88] : memref<8x8x128xf32, #tpu.memory_space<vmem>>, vector<1x8x128xf32>
    %210 = vector.shape_cast %209 : vector<1x8x128xf32> to vector<8x128xf32>
    %211 = vector.shape_cast %208 : vector<8x128xf32> to vector<1x8x128xf32>
    tpu.vector_store %arg7[%c6_86, %c0_87, %c0_88], %211 {strides = array<i32>} : memref<8x8x128xf32, #tpu.memory_space<vmem>>, vector<1x8x128xf32>,
    %c0_89 = arith.constant 0 : index
    %c0_90 = arith.constant 0 : index
    %c0_91 = arith.constant 0 : index
    %212 = vector.load %arg3[%c0_89, %c0_90, %c0_91] : memref<1x128x384xf32, #tpu.memory_space<vmem>>, vector<1x128x384xf32>
    %213 = vector.shape_cast %212 : vector<1x128x384xf32> to vector<128x384xf32>
    %cst_92 = arith.constant dense<0.000000e+00> : vector<8x384xf32>
    %214 = tpu.matmul %208, %213, %cst_92 {dimension_numbers = #tpu.dot_dimension_numbers<[1], [0], [0], [1], [0, 0, 1, 1], [], []>} : vector<8x128xf32>, vector<128x384xf32>, vector<8x384xf32> -> vector<8x384xf32>
    %c7 = arith.constant 7 : index
    %c0_93 = arith.constant 0 : index
    %c0_94 = arith.constant 0 : index
    %215 = vector.load %arg8[%c7, %c0_93, %c0_94] : memref<8x8x384xf32, #tpu.memory_space<vmem>>, vector<1x8x384xf32>
    %216 = vector.shape_cast %215 : vector<1x8x384xf32> to vector<8x384xf32>
    %217 = vector.extract_strided_slice %216 {offsets = [0, 0], sizes = [8, 256], strides = [1, 1]} : vector<8x384xf32> to vector<8x256xf32>
    %218 = vector.extract_strided_slice %214 {offsets = [0, 0], sizes = [8, 256], strides = [1, 1]} : vector<8x384xf32> to vector<8x256xf32>
    %219 = arith.addf %217, %218 : vector<8x256xf32>
    %220 = arith.negf %219 : vector<8x256xf32>
    %221 = math.exp %220 : vector<8x256xf32>
    %cst_95 = arith.constant 1.000000e+00 : f32
    %222 = vector.broadcast %cst_95 : f32 to vector<8x256xf32>
    %223 = arith.addf %222, %221 : vector<8x256xf32>
    %224 = arith.divf %222, %223 : vector<8x256xf32>
    %225 = vector.extract_strided_slice %224 {offsets = [0, 0], sizes = [8, 128], strides = [1, 1]} : vector<8x256xf32> to vector<8x128xf32>
    %226 = vector.extract_strided_slice %224 {offsets = [0, 128], sizes = [8, 128], strides = [1, 1]} : vector<8x256xf32> to vector<8x128xf32>
    %227 = vector.extract_strided_slice %216 {offsets = [0, 256], sizes = [8, 128], strides = [1, 1]} : vector<8x384xf32> to vector<8x128xf32>
    %228 = vector.extract_strided_slice %214 {offsets = [0, 256], sizes = [8, 128], strides = [1, 1]} : vector<8x384xf32> to vector<8x128xf32>
    %229 = arith.addf %228, %17 : vector<8x128xf32>
    %230 = arith.mulf %225, %229 : vector<8x128xf32>
    %231 = arith.addf %227, %230 : vector<8x128xf32>
    %232 = math.tanh %231 : vector<8x128xf32>
    %cst_96 = arith.constant 1.000000e+00 : f32
    %233 = vector.broadcast %cst_96 : f32 to vector<8x128xf32>
    %234 = arith.subf %233, %226 : vector<8x128xf32>
    %235 = arith.mulf %234, %232 : vector<8x128xf32>
    %236 = arith.mulf %226, %208 : vector<8x128xf32>
    %237 = arith.addf %235, %236 : vector<8x128xf32>
    %c7_97 = arith.constant 7 : index
    %c0_98 = arith.constant 0 : index
    %c0_99 = arith.constant 0 : index
    %238 = vector.load %arg7[%c7_97, %c0_98, %c0_99] : memref<8x8x128xf32, #tpu.memory_space<vmem>>, vector<1x8x128xf32>
    %239 = vector.shape_cast %238 : vector<1x8x128xf32> to vector<8x128xf32>
    %240 = vector.shape_cast %237 : vector<8x128xf32> to vector<1x8x128xf32>
    tpu.vector_store %arg7[%c7_97, %c0_98, %c0_99], %240 {strides = array<i32>} : memref<8x8x128xf32, #tpu.memory_space<vmem>>, vector<1x8x128xf32>,
    %c3_i32 = arith.constant 3 : i32
    %241 = arith.cmpi eq, %arg0, %c3_i32 : i32
    %242 = arith.extui %241 : i1 to i32
    %c0_i32_100 = arith.constant 0 : i32
    %243 = arith.cmpi ne, %242, %c0_i32_100 : i32
    scf.if %243 {
      %c0_101 = arith.constant 0 : index
      %c0_102 = arith.constant 0 : index
      %244 = vector.load %arg6[%c0_101, %c0_102] : memref<8x128xf32, #tpu.memory_space<vmem>>, vector<8x128xf32>
      tpu.vector_store %arg6[%c0_101, %c0_102], %237 {strides = array<i32>} : memref<8x128xf32, #tpu.memory_space<vmem>>, vector<8x128xf32>,
    } else {
    }
    return
  }
  func.func @transform_0(%arg0: i32) -> (i32, i32, i32) {
    %c0_i32 = arith.constant 0 : i32
    %c0_i32_0 = arith.constant 0 : i32
    %c0_i32_1 = arith.constant 0 : i32
    %c0_i32_2 = arith.constant 0 : i32
    return %c0_i32, %c0_i32_0, %c0_i32_1 : i32, i32, i32
  }
  func.func @transform_1(%arg0: i32) -> (i32, i32, i32) {
    %c0_i32 = arith.constant 0 : i32
    %c0_i32_0 = arith.constant 0 : i32
    %c0_i32_1 = arith.constant 0 : i32
    return %arg0, %c0_i32, %c0_i32_0 : i32, i32, i32
  }
  func.func @transform_2(%arg0: i32) -> (i32, i32, i32) {
    %c0_i32 = arith.constant 0 : i32
    %c0_i32_0 = arith.constant 0 : i32
    %c0_i32_1 = arith.constant 0 : i32
    return %arg0, %c0_i32, %c0_i32_0 : i32, i32, i32
  }
  func.func @transform_3(%arg0: i32) -> (i32, i32, i32) {
    %c0_i32 = arith.constant 0 : i32
    %c0_i32_0 = arith.constant 0 : i32
    %c0_i32_1 = arith.constant 0 : i32
    return %arg0, %c0_i32, %c0_i32_0 : i32, i32, i32
  }
  func.func @transform_4(%arg0: i32) -> (i32, i32, i32) {
    %c0_i32 = arith.constant 0 : i32
    %c0_i32_0 = arith.constant 0 : i32
    %c0_i32_1 = arith.constant 0 : i32
    return %arg0, %c0_i32, %c0_i32_0 : i32, i32, i32
  }
  func.func @transform_5(%arg0: i32) -> (i32, i32) {
    %c0_i32 = arith.constant 0 : i32
    %c0_i32_0 = arith.constant 0 : i32
    %c0_i32_1 = arith.constant 0 : i32
    return %c0_i32, %c0_i32_0 : i32, i32
  }
}

</mosaic_0001>

<bundles_post_ra>
// kernel: net_forward.1
= control target key start
LH: loop header
LB: loop body
LE: loop exit
PB: predicated region body
PF: predicated region fallthrough
CT: control target
= control target key end

     0   :  { %10 = vsyncpa [#allocation5], 0  ;;  %s4286_s0 = inlined_call_operand.vmem [shape: f32[8,8,128], index: 0, kind: input, shape index: {}]   ;;  %s4287_s1 = inlined_call_operand.hbm [shape: f32[4,128,384], index: 1, kind: input, shape index: {}]   ;;  %s4288_s2 = inlined_call_operand.hbm [shape: f32[4,128,384], index: 2, kind: input, shape index: {}]   ;;  %s4289_s3 = inlined_call_operand.vmem [shape: f32[4,1,384], index: 3, kind: input, shape index: {}]   ;;  %s4290_s4 = inlined_call_operand.vmem [shape: f32[4,1,128], index: 4, kind: input, shape index: {}]   ;;  %s4291_s5 = inlined_call_operand.vmem [shape: f32[8,128], index: 5, kind: output, shape index: {}]  }
   0x1   :  { %12 = vsyncpa [#allocation5 + $0x1], 0 }
   0x2   :  { %13 = vsyncpa [#allocation7], 0 }
   0x3   :  { %15 = vsyncpa [#allocation7 + $0x1], 0  ;;  %s3486_s18 = smov 0   ;;  %s3488_s19 = smov 0  }
   0x4   :  { %s3490_s20 = smov 0   ;;  %s3492_s21 = smov 0  }
   0x5 LB: > { %s3505_s22 = sadd.s32 4294967295, %s3447_s21   ;;  %s3508_s23 = sadd.s32 1, %s3447_s21   ;;  %s3447_s21 = sphi %s3492_s21, %s4301_s21   ;;  %s3443_s20 = sphi %s3490_s20, %s4300_s20   ;;  %s3439_s19 = sphi %s3488_s19, %s4299_s19   ;;  %s3435_s18 = sphi %s3486_s18, %s4298_s18  }
   0x6   : > { %s46_s24 = ssub.s32 %s3447_s21, %s3508_s23  ;;  %s49_s25 = sadd.s32 1, %s3443_s20 }
   0x7   : > { %p47_p0 = scmp.eq.s32.totalorder %s46_s24, 0  ;;  %p56_p1 = scmp.ne.s32.totalorder %s3443_s20, %s3439_s19 }
   0x8   : > { %p57_p2 = scmp.eq.s32.totalorder %s3447_s21, 0  ;;  %p62_p3 = scmp.ne.s32.totalorder %s3439_s19, %s3435_s18 }
   0x9   : > { %s3518_s26 = scalar_select %p47_p0, %s3443_s20, %s49_s25  }
   0xa   : > { %p58_p4 = por %p57_p2, %p56_p1  ;;  %p63_p5 = scmp.eq.s32.totalorder %s3505_s22, 0 }
   0xb   : > { %p3231_p6 = scmp.lt.s32.totalorder %s3447_s21, 4  ;;  %s3527_s28 = sand.u32 1, %s3443_s20  }
   0xc   : > { %p3522_p7 = por %p63_p5, %p62_p3  ;;  %s3214_s29 = smul.u32 384, %s3527_s28 }
   0xd   : > { %s3215_s30 = smul.u32 6144, %s3447_s21  ;;  %p3531_p8 = pnand %p3231_p6, %p58_p4 }
   0xe   : > { %s4293_s27 = scalar_select %p3522_p7, 1, 0 }
   0xf   : > { %s3540_s9 = scalar_lea.hbm %s4287_s1, %s3215_s30  ;;  %s192_s10 = scalar_lea.vmem [#allocation4], %s3214_s29 }
  0x10   : > { %s199_s11 = sshll.u32 %s192_s10, 4  ;;  %s189_s12 = scalar_lea.sflag [#allocation5], %s3527_s28  ;;  %s3544_s11 = int_to_ptr.vmem [resolvable:$true] %s199_s11 }
  0x11   : > { %s3349_s13 = scalar_lea.hbm %s3540_s9, 6144  ;;  %p3351_p11 = pneg %p3531_p8 }
  0x12   : > { %p3350_p10 = scmp.ne.s32.totalorder %s3540_s9, %s3349_s13  ;;  %s3354_s16 = scalar_lea.hbm %s4287_s1, 24576 }
  0x13   : > { %p3355_p0 = scmp.lt.u32.totalorder %s3540_s9, %s4287_s1  ;;  %p3356_p1 = scmp.lt.u32.totalorder %s3354_s16, %s3349_s13 }
  0x14   : > { %p3352_p12 = pnand %p3351_p11, %p3350_p10  ;;  %p3358_p3 = scmp.lt.u32.totalorder %s3349_s13, %s3540_s9 }
  0x15   : > { %p3357_p2 = por %p3356_p1, %p3355_p0 }
  0x16   : > { %p3353_p13 = pneg %p3352_p12 }
  0x17   : > { %p3359_p4 = por %p3358_p3, %p3357_p2 }
  0x19   : > { %p3360_p5 = pnand %p3359_p4, %p3353_p13 }
  0x1b   : > { %3363 = shalt.err (!%p3360_p5)
}
  0x1c   : > { %s3364_s24 = scalar_lea.vmem %s3544_s11, 6144  ;;  %s3449_s25 = smov [#allocation4]  }
  0x1d   : > { %p3365_p6 = scmp.ne.s32.totalorder %s3544_s11, %s3364_s24  ;;  %s3369_s7 = sshll.u32 %s3449_s25, 4  ;;  %s3370_s7 = int_to_ptr.vmem [resolvable:$false] %s3369_s7 }
  0x1e   : > { %s3371_s8 = scalar_lea.vmem %s3370_s7, 12288  ;;  %p3372_p9 = scmp.lt.s32.totalorder %s3544_s11, %s3370_s7 }
  0x1f   : > { %p3367_p10 = pnand %p3365_p6, %p3351_p11  ;;  %p3373_p0 = scmp.lt.s32.totalorder %s3371_s8, %s3364_s24 }
  0x21   : > { %p3368_p12 = pneg %p3367_p10  ;;  %p3374_p1 = por %p3373_p0, %p3372_p9 }
  0x23   : > { %p3375_p2 = pnand %p3374_p1, %p3368_p12 }
  0x25   : > { %3378 = shalt.err (!%p3375_p2)
}
  0x26   : > { %s3450_s10 = smov 384   ;;  %s3451_s13 = smov 24  }
  0x27   : > { %3227 = dma.hbm_to_vmem [thread:$0]  (!%p3531_p8), %s3540_s9, 6144, %s3544_s11, %s189_s12, %s3450_s10, %s3450_s10, %s3451_s13  }
  0x28   : > { %p241_p9 = scmp.lt.s32.totalorder %s3447_s21, 5  ;;  %s3584_s16 = scalar_lea.hbm %s4288_s2, %s3215_s30 }
  0x29   : > { %p4295_p13 = scmp.ge.s32.totalorder %s3447_s21, 1  ;;  %s213_s18 = scalar_lea.vmem [#allocation6], %s3214_s29 }
  0x2a   : > { %s220_s24 = sshll.u32 %s213_s18, 4  ;;  %s210_s9 = scalar_lea.sflag [#allocation7], %s3527_s28  ;;  %s3594_s24 = int_to_ptr.vmem [resolvable:$true] %s220_s24 }
  0x2b   : > { %p3588_p3 = pnand %p4295_p13, %p241_p9  ;;  %s3379_s11 = scalar_lea.hbm %s3584_s16, 6144 }
  0x2c   : > { %p3380_p4 = scmp.ne.s32.totalorder %s3584_s16, %s3379_s11  ;;  %s3384_s12 = scalar_lea.hbm %s4288_s2, 24576 }
  0x2d   : > { %p3385_p10 = scmp.lt.u32.totalorder %s3584_s16, %s4288_s2  ;;  %p3386_p12 = scmp.lt.u32.totalorder %s3384_s12, %s3379_s11 }
  0x2e   : > { %p3382_p5 = pnand %p3380_p4, %p3351_p11  ;;  %p3388_p1 = scmp.lt.u32.totalorder %s3379_s11, %s3584_s16 }
  0x2f   : > { %p3387_p0 = por %p3386_p12, %p3385_p10 }
  0x30   : > { %p3383_p6 = pneg %p3382_p5 }
  0x31   : > { %p3389_p2 = por %p3388_p1, %p3387_p0 }
  0x33   : > { %p3390_p9 = pnand %p3389_p2, %p3383_p6 }
  0x35   : > { %3393 = shalt.err (!%p3390_p9)
}
  0x36   : > { %s3394_s29 = scalar_lea.vmem %s3594_s24, 6144  ;;  %s3452_s8 = smov [#allocation6]  }
  0x37   : > { %p3395_p13 = scmp.ne.s32.totalorder %s3594_s24, %s3394_s29  ;;  %s3399_s14 = sshll.u32 %s3452_s8, 4  ;;  %s3400_s14 = int_to_ptr.vmem [resolvable:$false] %s3399_s14 }
  0x38   : > { %s3401_s15 = scalar_lea.vmem %s3400_s14, 12288  ;;  %p3402_p7 = scmp.lt.s32.totalorder %s3594_s24, %s3400_s14 }
  0x39   : > { %p3397_p4 = pnand %p3395_p13, %p3351_p11  ;;  %p3403_p10 = scmp.lt.s32.totalorder %s3401_s15, %s3394_s29 }
  0x3b   : > { %p3398_p5 = pneg %p3397_p4  ;;  %p3404_p12 = por %p3403_p10, %p3402_p7 }
  0x3d   : > { %p3405_p0 = pnand %p3404_p12, %p3398_p5 }
  0x3f   : > { %3408 = shalt.err (!%p3405_p0)
}
  0x40   : > { %3230 = dma.hbm_to_vmem [thread:$0]  (!%p3531_p8), %s3584_s16, 6144, %s3594_s24, %s210_s9, %s3450_s10, %s3450_s10, %s3451_s13  }
  0x41   : > { %245 = sbr.rel (%p3588_p3) target bundleno = 2191 (0x88f), region = 40  ;;  %s247_s18 = sand.u32 (!%p3588_p3), 1, %s3439_s19  }
  0x42   : > { %s3218_s11 = smul.u32 (!%p3588_p3), 384, %s247_s18  ;;  %s248_s21 = scalar_lea.sflag (!%p3588_p3), [#allocation5], %s247_s18 }
  0x43   : > { %p4297_p7 = scmp.ne.s32.totalorder (!%p3588_p3), %s4293_s27, 0 }
  0x44   : > { %s3628_s30 = scalar_lea.vmem (!%p3588_p3), [#allocation4], %s3218_s11 }
  0x48   : > { %3426 = dma.done.wait (%p4297_p7), %s248_s21, 6144  }
  0x49   : > { %3428 = vsyncadd (%p4297_p7), %s248_s21, 4294961152  ;;  %s257_s28 = scalar_lea.sflag [#allocation7], %s247_s18  ;;  %s3634_s6 = scalar_lea.vmem [#allocation6], %s3218_s11 }
  0x4a   : > { %3430 = dma.done.wait (%p4297_p7), %s257_s28, 6144  }
  0x4b   : > { %3432 = vsyncadd (%p4297_p7), %s257_s28, 4294961152  ;;  %p294_p8 = scmp.lt.s32.totalorder %s3505_s22, 3  ;;  %p2277_p11 = scmp.ne.s32.totalorder %s3505_s22, 0 }
  0x4c   : > { %v305_v0 = vld [vmem:[%s4286_s0] sm:$0xff] (!%p2277_p11)  ;;  %v306_v1 = vld [vmem:[%s4286_s0 + $0x8] sm:$0xff] (!%p2277_p11)  ;;  %v307_v2 = vld [vmem:[%s4286_s0 + $0x10] sm:$0xff] (!%p2277_p11) }
  0x4d   : > { %s3642_s10 = scalar_select %p294_p8, %s3505_s22, 3 }
  0x4e   : > { %304 = sbr.rel (%p2277_p11) target bundleno = 85 (0x55), region = 52  ;;  %313 = vst [vmem:[#allocation2] sm:$0xff] (!%p2277_p11), %v305_v0  ;;  %314 = vst [vmem:[#allocation2 + $0x8] sm:$0xff] (!%p2277_p11), %v306_v1  ;;  %v308_v3 = vld [vmem:[%s4286_s0 + $0x18] sm:$0xff] (!%p2277_p11)  ;;  %v309_v4 = vld [vmem:[%s4286_s0 + $0x20] sm:$0xff] (!%p2277_p11) }
  0x4f   : > { %s3219_s13 = smul.u32 3, %s3642_s10  ;;  %s300_s24 = scalar_lea.vmem %s4290_s4, %s3642_s10  ;;  %315 = vst [vmem:[#allocation2 + $0x10] sm:$0xff] (!%p2277_p11), %v307_v2  ;;  %v310_v5 = vld [vmem:[%s4286_s0 + $0x28] sm:$0xff] (!%p2277_p11)  ;;  %316 = vst [vmem:[#allocation2 + $0x18] sm:$0xff] (!%p2277_p11), %v308_v3  ;;  %v311_v6 = vld [vmem:[%s4286_s0 + $0x30] sm:$0xff] (!%p2277_p11) }
  0x50   : > { %317 = vst [vmem:[#allocation2 + $0x20] sm:$0xff] (!%p2277_p11), %v309_v4  ;;  %318 = vst [vmem:[#allocation2 + $0x28] sm:$0xff] (!%p2277_p11), %v310_v5  ;;  %v312_v7 = vld [vmem:[%s4286_s0 + $0x38] sm:$0xff] (!%p2277_p11) }
  0x51   : > { %s3652_s25 = scalar_lea.vmem %s4289_s3, %s3219_s13  ;;  %319 = vst [vmem:[#allocation2 + $0x30] sm:$0xff] (!%p2277_p11), %v311_v6  ;;  %320 = vst [vmem:[#allocation2 + $0x38] sm:$0xff] (!%p2277_p11), %v312_v7 }
  0x55 PF: > { %v330_v8 = vld [vmem:[%s3628_s30 + $0x8] sm:$0xff]  ;;  %v333_v9 = vld [vmem:[%s3628_s30 + $0x20] sm:$0xff]  ;;  %v332_v12 = vld [vmem:[%s3628_s30 + $0x18] sm:$0xff]  ;;  %v3453_v15 = vmov 0.0   ;;  %vm3455_vm0 = vmmov 0   ;;  %p2295_p3 = scmp.ne.s32.totalorder %s3505_s22, 3 }
  0x56   : > { %v329_v10 = vld [vmem:[%s3628_s30] sm:$0xff]  ;;  %v2730_v11 = vpack.c.bf16 %v333_v9, %v330_v8  ;;  %v336_v13 = vld [vmem:[%s3628_s30 + $0x38] sm:$0xff]  ;;  %v339_v14 = vld [vmem:[%s3628_s30 + $0x50] sm:$0xff]  ;;  %458 = vmatprep.mubr.f32.mxu0 %v3453_v15 }
  0x57   : > { %v2732_v16 = vpack.c.bf16 %v332_v12, %v329_v10  ;;  %v2734_v17 = vpack.c.bf16 %v339_v14, %v336_v13  ;;  %v335_v18 = vld [vmem:[%s3628_s30 + $0x30] sm:$0xff]  ;;  %v338_v19 = vld [vmem:[%s3628_s30 + $0x48] sm:$0xff]  ;;  %v345_v21 = vld [vmem:[%s3628_s30 + $0x80] sm:$0xff] }
  0x58   : > { %v342_v20 = vld [vmem:[%s3628_s30 + $0x68] sm:$0xff]  ;;  %2731 = vmatprep.subr.bf16.mxu0 %v2730_v11  ;;  %v2736_v22 = vpack.c.bf16 %v338_v19, %v335_v18  ;;  %v341_v24 = vld [vmem:[%s3628_s30 + $0x60] sm:$0xff]  ;;  %v344_v25 = vld [vmem:[%s3628_s30 + $0x78] sm:$0xff] }
  0x59   : > { %2733 = vmatpush1.bf16.msra.mxu0 %v2732_v16  ;;  %v2738_v23 = vpack.c.bf16 %v345_v21, %v342_v20  ;;  %v348_v26 = vld [vmem:[%s3628_s30 + $0x98] sm:$0xff]  ;;  %v351_v27 = vld [vmem:[%s3628_s30 + $0xb0] sm:$0xff]  ;;  %v2740_v28 = vpack.c.bf16 %v344_v25, %v341_v24  ;;  %v350_v31 = vld [vmem:[%s3628_s30 + $0xa8] sm:$0xff] }
  0x5a   : > { %2735 = vmatprep.subr.bf16.mxu0 %v2734_v17  ;;  %v347_v29 = vld [vmem:[%s3628_s30 + $0x90] sm:$0xff]  ;;  %v2742_v30 = vpack.c.bf16 %v351_v27, %v348_v26  ;;  %v334_v33 = vld [vmem:[%s3628_s30 + $0x28] sm:$0xff]  ;;  %v357_v35 = vld [vmem:[%s3628_s30 + $0xe0] sm:$0xff] }
  0x5b   : > { %v331_v32 = vld [vmem:[%s3628_s30 + $0x10] sm:$0xff]  ;;  %v354_v34 = vld [vmem:[%s3628_s30 + $0xc8] sm:$0xff]  ;;  %v337_v37 = vld [vmem:[%s3628_s30 + $0x40] sm:$0xff]  ;;  %v2744_v39 = vpack.c.bf16 %v350_v31, %v347_v29 }
  0x5c   : > { %v2762_v36 = vpack.c.bf16 %v334_v33, %v331_v32  ;;  %v340_v38 = vld [vmem:[%s3628_s30 + $0x58] sm:$0xff]  ;;  %v343_v41 = vld [vmem:[%s3628_s30 + $0x70] sm:$0xff]  ;;  %v346_v42 = vld [vmem:[%s3628_s30 + $0x88] sm:$0xff]  ;;  %v2746_v43 = vpack.c.bf16 %v357_v35, %v354_v34 }
  0x5d   : > { %2737 = vmatpush1.bf16.msra.mxu0 %v2736_v22  ;;  %v2766_v40 = vpack.c.bf16 %v340_v38, %v337_v37  ;;  %v353_v44 = vld [vmem:[%s3628_s30 + $0xc0] sm:$0xff]  ;;  %v356_v45 = vld [vmem:[%s3628_s30 + $0xd8] sm:$0xff]  ;;  %v363_v48 = vld [vmem:[%s3628_s30 + $0x110] sm:$0xff]  ;;  %v2770_v49 = vpack.c.bf16 %v346_v42, %v343_v41 }
  0x5e   : > { %2739 = vmatprep.subr.bf16.mxu0 %v2738_v23  ;;  %2763 = vmatprep.subr.bf16.mxu1 %v2762_v36  ;;  %v321_v46 = vld [vmem:[#allocation2] sm:$0xff]  ;;  %v360_v47 = vld [vmem:[%s3628_s30 + $0xf8] sm:$0xff]  ;;  %v2748_v52 = vpack.c.bf16 %v356_v45, %v353_v44  ;;  %v359_v54 = vld [vmem:[%s3628_s30 + $0xf0] sm:$0xff] }
  0x5f   : > { %2765 = vmatpush3.bf16.msra.mxu1 %v2762_v36  ;;  %2473 = vmatprep.mubr.f32.mxu1 %v321_v46  ;;  %v349_v50 = vld [vmem:[%s3628_s30 + $0xa0] sm:$0xff]  ;;  %v352_v51 = vld [vmem:[%s3628_s30 + $0xb8] sm:$0xff]  ;;  %v2750_v53 = vpack.c.bf16 %v363_v48, %v360_v47  ;;  %v362_v55 = vld [vmem:[%s3628_s30 + $0x108] sm:$0xff] }
  0x60   : > { %2767 = vmatprep.subr.bf16.mxu1 %v2766_v40  ;;  %v366_v56 = vld [vmem:[%s3628_s30 + $0x128] sm:$0xff]  ;;  %v369_v57 = vld [vmem:[%s3628_s30 + $0x140] sm:$0xff]  ;;  %v2774_v58 = vpack.c.bf16 %v352_v51, %v349_v50  ;;  %v355_v59 = vld [vmem:[%s3628_s30 + $0xd0] sm:$0xff]  ;;  %v2752_v61 = vpack.c.bf16 %v362_v55, %v359_v54 }
  0x61   : > { %2741 = vmatpush1.bf16.msra.mxu0 %v2740_v28  ;;  %v358_v60 = vld [vmem:[%s3628_s30 + $0xe8] sm:$0xff]  ;;  %v2754_v62 = vpack.c.bf16 %v369_v57, %v366_v56  ;;  %v365_v63 = vld [vmem:[%s3628_s30 + $0x120] sm:$0xff]  ;;  %v368_v0 = vld [vmem:[%s3628_s30 + $0x138] sm:$0xff]  ;;  %v3454_v28 = vmov 0.0|0.0  }
  0x62   : > { %2743 = vmatprep.subr.bf16.mxu0 %v2742_v30  ;;  %v372_v1 = vld [vmem:[%s3628_s30 + $0x158] sm:$0xff]  ;;  %v375_v2 = vld [vmem:[%s3628_s30 + $0x170] sm:$0xff]  ;;  %v2778_v3 = vpack.c.bf16 %v358_v60, %v355_v59  ;;  %v361_v4 = vld [vmem:[%s3628_s30 + $0x100] sm:$0xff]  ;;  %v2756_v6 = vpack.c.bf16 %v368_v0, %v365_v63 }
  0x63   : > { %2769 = vmatpush3.bf16.msra.mxu1 %v2766_v40  ;;  %v364_v5 = vld [vmem:[%s3628_s30 + $0x118] sm:$0xff]  ;;  %v2758_v7 = vpack.c.bf16 %v375_v2, %v372_v1  ;;  %v371_v8 = vld [vmem:[%s3628_s30 + $0x150] sm:$0xff]  ;;  %v374_v9 = vld [vmem:[%s3628_s30 + $0x168] sm:$0xff] }
  0x64   : > { %2771 = vmatprep.subr.bf16.mxu1 %v2770_v49  ;;  %v2782_v10 = vpack.c.bf16 %v364_v5, %v361_v4  ;;  %v367_v11 = vld [vmem:[%s3628_s30 + $0x130] sm:$0xff]  ;;  %v370_v12 = vld [vmem:[%s3628_s30 + $0x148] sm:$0xff]  ;;  %v2760_v13 = vpack.c.bf16 %v374_v9, %v371_v8  ;;  %v373_v16 = vld [vmem:[%s3628_s30 + $0x160] sm:$0xff] }
  0x65   : > { %2745 = vmatpush1.bf16.msra.mxu0 %v2744_v39  ;;  %v2786_v14 = vpack.c.bf16 %v370_v12, %v367_v11  ;;  %v376_v17 = vld [vmem:[%s3628_s30 + $0x178] sm:$0xff]  ;;  %v322_v19 = vld [vmem:[#allocation2 + $0x8] sm:$0xff]  ;;  %v668_v21 = vld [vmem:[%s3634_s6 + $0x20] sm:$0xff] }
  0x66   : > { %2747 = vmatprep.subr.bf16.mxu0 %v2746_v43  ;;  %v2790_v18 = vpack.c.bf16 %v376_v17, %v373_v16  ;;  %v665_v20 = vld [vmem:[%s3634_s6 + $0x8] sm:$0xff]  ;;  %v664_v23 = vld [vmem:[%s3634_s6] sm:$0xff]  ;;  %v667_v24 = vld [vmem:[%s3634_s6 + $0x18] sm:$0xff] }
  0x67   : > { %2773 = vmatpush3.bf16.msra.mxu1 %v2770_v49  ;;  %v3732_v22 = vpack.c.bf16 %v668_v21, %v665_v20  ;;  %v666_v25 = vld [vmem:[%s3634_s6 + $0x10] sm:$0xff]  ;;  %v3737_v26 = vpack.c.bf16 %v667_v24, %v664_v23  ;;  %v669_v27 = vld [vmem:[%s3634_s6 + $0x28] sm:$0xff]  ;;  %v671_v30 = vld [vmem:[%s3634_s6 + $0x38] sm:$0xff] }
  0x68   : > { %2775 = vmatprep.subr.bf16.mxu1 %v2774_v58  ;;  %v3742_v29 = vpack.c.bf16 %v669_v27, %v666_v25  ;;  %v674_v31 = vld [vmem:[%s3634_s6 + $0x50] sm:$0xff]  ;;  %v673_v34 = vld [vmem:[%s3634_s6 + $0x48] sm:$0xff]  ;;  %v672_v35 = vld [vmem:[%s3634_s6 + $0x40] sm:$0xff] }
  0x69   : > { %2749 = vmatpush1.bf16.msra.mxu0 %v2748_v52  ;;  %v3748_v32 = vpack.c.bf16 %v674_v31, %v671_v30  ;;  %v670_v33 = vld [vmem:[%s3634_s6 + $0x30] sm:$0xff]  ;;  %v675_v37 = vld [vmem:[%s3634_s6 + $0x58] sm:$0xff]  ;;  %v677_v39 = vld [vmem:[%s3634_s6 + $0x68] sm:$0xff] }
  0x6a   : > { %2751 = vmatprep.subr.bf16.mxu0 %v2750_v53  ;;  %v3753_v36 = vpack.c.bf16 %v673_v34, %v670_v33  ;;  %v3758_v38 = vpack.c.bf16 %v675_v37, %v672_v35  ;;  %v680_v40 = vld [vmem:[%s3634_s6 + $0x80] sm:$0xff]  ;;  %v679_v43 = vld [vmem:[%s3634_s6 + $0x78] sm:$0xff]  ;;  %v678_v44 = vld [vmem:[%s3634_s6 + $0x70] sm:$0xff] }
  0x6b   : > { %2777 = vmatpush3.bf16.msra.mxu1 %v2774_v58  ;;  %v3764_v41 = vpack.c.bf16 %v680_v40, %v677_v39  ;;  %v676_v42 = vld [vmem:[%s3634_s6 + $0x60] sm:$0xff]  ;;  %v323_v45 = vld [vmem:[#allocation2 + $0x10] sm:$0xff]  ;;  %v681_v47 = vld [vmem:[%s3634_s6 + $0x88] sm:$0xff] }
  0x6c   : > { %2779 = vmatprep.subr.bf16.mxu1 %v2778_v3  ;;  %v3774_v48 = vpack.c.bf16 %v681_v47, %v678_v44  ;;  %v683_v49 = vld [vmem:[%s3634_s6 + $0x98] sm:$0xff]  ;;  %v686_v50 = vld [vmem:[%s3634_s6 + $0xb0] sm:$0xff]  ;;  %v685_v53 = vld [vmem:[%s3634_s6 + $0xa8] sm:$0xff]  ;;  %v379_v44 = vlaneseq }
  0x6d   : > { %2753 = vmatpush1.bf16.msra.mxu0 %v2752_v61  ;;  %v3781_v51 = vpack.c.bf16 %v686_v50, %v683_v49  ;;  %v682_v52 = vld [vmem:[%s3634_s6 + $0x90] sm:$0xff]  ;;  %v684_v54 = vld [vmem:[%s3634_s6 + $0xa0] sm:$0xff]  ;;  %v324_v55 = vld [vmem:[#allocation2 + $0x18] sm:$0xff] }
  0x6e   : > { %2755 = vmatprep.subr.bf16.mxu0 %v2754_v62  ;;  %v3786_v56 = vpack.c.bf16 %v685_v53, %v682_v52  ;;  %v687_v57 = vld [vmem:[%s3634_s6 + $0xb8] sm:$0xff]  ;;  %v689_v59 = vld [vmem:[%s3634_s6 + $0xc8] sm:$0xff]  ;;  %v692_v60 = vld [vmem:[%s3634_s6 + $0xe0] sm:$0xff] }
  0x6f   : > { %2781 = vmatpush3.bf16.msra.mxu1 %v2778_v3  ;;  %v3791_v58 = vpack.c.bf16 %v687_v57, %v684_v54  ;;  %v3798_v61 = vpack.c.bf16 %v692_v60, %v689_v59  ;;  %v688_v62 = vld [vmem:[%s3634_s6 + $0xc0] sm:$0xff]  ;;  %v691_v63 = vld [vmem:[%s3634_s6 + $0xd8] sm:$0xff]  ;;  %v690_v2 = vld [vmem:[%s3634_s6 + $0xd0] sm:$0xff] }
  0x70   : > { %2783 = vmatprep.subr.bf16.mxu1 %v2782_v10  ;;  %v325_v0 = vld [vmem:[#allocation2 + $0x20] sm:$0xff]  ;;  %v3802_v1 = vpack.c.bf16 %v691_v63, %v688_v62  ;;  %v693_v3 = vld [vmem:[%s3634_s6 + $0xe8] sm:$0xff]  ;;  %v695_v5 = vld [vmem:[%s3634_s6 + $0xf8] sm:$0xff] }
  0x71   : > { %2757 = vmatpush1.bf16.msra.mxu0 %v2756_v6  ;;  %v3808_v4 = vpack.c.bf16 %v693_v3, %v690_v2  ;;  %v698_v6 = vld [vmem:[%s3634_s6 + $0x110] sm:$0xff]  ;;  %v697_v9 = vld [vmem:[%s3634_s6 + $0x108] sm:$0xff]  ;;  %v704_v17 = vld [vmem:[%s3634_s6 + $0x140] sm:$0xff] }
  0x72   : > { %2759 = vmatprep.subr.bf16.mxu0 %v2758_v7  ;;  %v3815_v7 = vpack.c.bf16 %v698_v6, %v695_v5  ;;  %v694_v8 = vld [vmem:[%s3634_s6 + $0xf0] sm:$0xff]  ;;  %v326_v11 = vld [vmem:[#allocation2 + $0x28] sm:$0xff]  ;;  %v703_v21 = vld [vmem:[%s3634_s6 + $0x138] sm:$0xff] }
  0x73   : > { %2785 = vmatpush3.bf16.msra.mxu1 %v2782_v10  ;;  %v696_v10 = vld [vmem:[%s3634_s6 + $0x100] sm:$0xff]  ;;  %v3820_v12 = vpack.c.bf16 %v697_v9, %v694_v8  ;;  %v702_v23 = vld [vmem:[%s3634_s6 + $0x130] sm:$0xff]  ;;  %v705_v24 = vld [vmem:[%s3634_s6 + $0x148] sm:$0xff] }
  0x74   : > { %2787 = vmatprep.subr.bf16.mxu1 %v2786_v14  ;;  %v3840_v27 = vpack.c.bf16 %v705_v24, %v702_v23  ;;  %v707_v30 = vld [vmem:[%s3634_s6 + $0x158] sm:$0xff]  ;;  %v710_v31 = vld [vmem:[%s3634_s6 + $0x170] sm:$0xff]  ;;  %v709_v35 = vld [vmem:[%s3634_s6 + $0x168] sm:$0xff] }
  0x75   : > { %2761 = vmatpush1.bf16.msra.mxu0 %v2760_v13  ;;  %v699_v13 = vld [vmem:[%s3634_s6 + $0x118] sm:$0xff]  ;;  %v3845_v33 = vpack.c.bf16 %v710_v31, %v707_v30  ;;  %v706_v34 = vld [vmem:[%s3634_s6 + $0x150] sm:$0xff]  ;;  %v708_v37 = vld [vmem:[%s3634_s6 + $0x160] sm:$0xff] }
  0x76   : > { %2795 = vmatprep.subr.bf16.mxu0 %v3732_v22  ;;  %v3826_v16 = vpack.c.bf16 %v699_v13, %v696_v10  ;;  %v328_v39 = vld [vmem:[#allocation2 + $0x38] sm:$0xff]  ;;  %v377_v49 = vld [vmem:[%s3652_s25] sm:$0x7] }
  0x77   : > { %2789 = vmatpush3.bf16.msra.mxu1 %v2786_v14  ;;  %v701_v14 = vld [vmem:[%s3634_s6 + $0x128] sm:$0xff]  ;;  %v711_v40 = vld [vmem:[%s3634_s6 + $0x178] sm:$0xff]  ;;  %v3884_v10 = vld [vmem:[%s300_s24] ss:$0 sm:$0xff] }
  0x78   : > { %459 = vmatmul.mubr.f32.vlgmr.msra.gmra.mrb[0].mxu0 %v321_v46  ;;  %2791 = vmatprep.subr.bf16.mxu1 %v2790_v18  ;;  %v3769_v46 = vpack.c.bf16 %v679_v43, %v676_v42  ;;  %v3832_v20 = vpack.c.bf16 %v704_v17, %v701_v14  ;;  %v3854_v42 = vpack.c.bf16 %v709_v35, %v706_v34 }
  0x79   : > { %464 = vmatprep.mubr.f32.mxu0 %v3453_v15  ;;  %2797 = vmatpush1.bf16.msra.mxu0 %v3737_v26  ;;  %v3857_v43 = vpack.c.bf16 %v711_v40, %v708_v37 }
  0x7a   : > { %2799 = vmatprep.subr.bf16.mxu0 %v3748_v32 }
  0x7b   : > { %2793 = vmatpush3.bf16.msra.mxu1 %v2790_v18  ;;  %v327_v18 = vld [vmem:[#allocation2 + $0x30] sm:$0xff] }
  0x7c   : > { %465 = vmatmul.mubr.f32.gmra.mrb[2].mxu0 %v322_v19  ;;  %2826 = vmatprep.subr.bf16.mxu1 %v3454_v28 }
  0x7d   : > { %470 = vmatprep.mubr.f32.mxu0 %v3453_v15  ;;  %2801 = vmatpush1.bf16.msra.mxu0 %v3753_v36 }
  0x7e   : > { %2474 = vmatmul.mubr.f32.vlgmr.msra.gmra.mrb[0].mxu1 %v322_v19  ;;  %2803 = vmatprep.subr.bf16.mxu0 %v3764_v41  ;;  %v700_v19 = vld [vmem:[%s3634_s6 + $0x120] sm:$0xff] }
  0x7f   : > { %2828 = vmatpush3.bf16.msra.mxu1 %v3742_v29  ;;  %2476 = vmatprep.mubr.f32.mxu1 %v323_v45  ;;  %v3838_v25 = vpack.c.bf16 %v703_v21, %v700_v19 }
  0x80   : > { %2829 = vmatprep.subr.bf16.mxu1 %v3454_v28  ;;  %471 = vmatmul.mubr.f32.gmra.mrb[4].mxu0 %v323_v45  ;;  %v380_v45 = vshrl.u32 %v379_v44, 7 }
  0x81   : > { %2805 = vmatpush1.bf16.msra.mxu0 %v3769_v46  ;;  %476 = vmatprep.mubr.f32.mxu0 %v3453_v15 }
  0x82   : > { %2807 = vmatprep.subr.bf16.mxu0 %v3781_v51  ;;  %2477 = vmatmul.mubr.f32.gmra.mrb[2].mxu1 %v324_v55  ;;  %v381_v47 = vsub.s32 0, %v380_v45  ;;  %v385_v50 = vsub.s32 1, %v380_v45  ;;  %v389_v5 = vsub.s32 2, %v380_v45 }
  0x83   : > { %2831 = vmatpush3.bf16.msra.mxu1 %v3758_v38  ;;  %2479 = vmatprep.mubr.f32.mxu1 %v325_v0 }
  0x84   : > { %2832 = vmatprep.subr.bf16.mxu1 %v3454_v28  ;;  %477 = vmatmul.mubr.f32.gmra.mrb[6].mxu0 %v324_v55  ;;  %v3869_v52 = vrot.slane %v377_v49, %v381_v47  ;;  %v3871_v54 = vrot.slane %v377_v49, %v385_v50  ;;  %v3877_v8 = vrot.slane %v377_v49, %v389_v5 }
  0x85   : > { %2809 = vmatpush1.bf16.msra.mxu0 %v3786_v56  ;;  %482 = vmatprep.mubr.f32.mxu0 %v3453_v15 }
  0x86   : > { %2811 = vmatprep.subr.bf16.mxu0 %v3798_v61  ;;  %2480 = vmatmul.mubr.f32.gmra.mrb[4].mxu1 %v326_v11 }
  0x87   : > { %2834 = vmatpush3.bf16.msra.mxu1 %v3774_v48  ;;  %2482 = vmatprep.mubr.f32.mxu1 %v327_v18 }
  0x88   : > { %2835 = vmatprep.subr.bf16.mxu1 %v3454_v28  ;;  %483 = vmatmul.mubr.f32.gmra.mrb[8].mxu0 %v325_v0 }
  0x89   : > { %2813 = vmatpush1.bf16.msra.mxu0 %v3802_v1  ;;  %488 = vmatprep.mubr.f32.mxu0 %v3453_v15 }
  0x8a   : > { %2815 = vmatprep.subr.bf16.mxu0 %v3815_v7  ;;  %2483 = vmatmul.mubr.f32.gmra.mrb[6].mxu1 %v328_v39 }
  0x8b   : > { %2837 = vmatpush3.bf16.msra.mxu1 %v3791_v58  ;;  %2517 = vmatprep.mubr.msk.f32.mxu1 %vm3455_vm0, %v3453_v15 }
  0x8c   : > { %2838 = vmatprep.subr.bf16.mxu1 %v3454_v28  ;;  %489 = vmatmul.mubr.f32.gmra.mrb[10].mxu0 %v326_v11 }
  0x8d   : > { %2817 = vmatpush1.bf16.msra.mxu0 %v3820_v12  ;;  %494 = vmatprep.mubr.f32.mxu0 %v3453_v15 }
  0x8e   : > { %2819 = vmatprep.subr.bf16.mxu0 %v3832_v20 }
  0x8f   : > { %2840 = vmatpush3.bf16.msra.mxu1 %v3808_v4 }
  0x90   : > { %2841 = vmatprep.subr.bf16.mxu1 %v3454_v28  ;;  %495 = vmatmul.mubr.f32.gmra.mrb[12].mxu0 %v327_v18 }
  0x91   : > { %2821 = vmatpush1.bf16.msra.mxu0 %v3838_v25  ;;  %500 = vmatprep.mubr.f32.mxu0 %v3453_v15 }
  0x92   : > { %2823 = vmatprep.subr.bf16.mxu0 %v3845_v33 }
  0x93   : > { %2843 = vmatpush3.bf16.msra.mxu1 %v3826_v16 }
  0x94   : > { %2844 = vmatprep.subr.bf16.mxu1 %v3454_v28  ;;  %501 = vmatmul.mubr.f32.gmra.mrb[14].mxu0 %v328_v39 }
  0x95   : > { %2825 = vmatpush1.bf16.msra.mxu0 %v3854_v42  ;;  %776 = vmatprep.mubr.f32.mxu0 %v3453_v15 }
  0x96   : > { %2851 = vmatprep.subr.bf16.mxu0 %v3732_v22 }
  0x97   : > { %2846 = vmatpush3.bf16.msra.mxu1 %v3840_v27 }
  0x98   : > { %2847 = vmatprep.subr.bf16.mxu1 %v3454_v28 }
  0x9b   : > { %2849 = vmatpush3.bf16.msra.mxu1 %v3857_v43 }
  0x9c   : > { %2882 = vmatprep.subr.bf16.mxu1 %v3454_v28 }
 0x14b   : > { %v460_v53 = vpop.f32.mrb[0].mxu0 }
 0x14c   : > { %v461_v55 = vadd.f32 %v460_v53, %v3869_v52  ;;  %v462_v57 = vpop.f32.mrb[1].mxu0 }
 0x14d   : > { %v463_v60 = vadd.f32 %v462_v57, %v3871_v54 }
 0x14e   : > { %v2279_v59 = vmul.f32 -1.442695, %v461_v55 }
 0x14f   : > { %v2280_v62 = vmul.f32 -1.442695, %v463_v60 }
 0x150   : > { %3269 = vpow2.f32 %v2279_v59 }
 0x151   : > { %v3875_v63 = vpop.f32.mrb[0].mxu1  ;;  %3271 = vpow2.f32 %v2280_v62 }
 0x152   : > { %v573_v0 = vpop.f32.mrb[1].mxu1 }
 0x153   : > { %v574_v11 = vadd.f32 %v573_v0, %v3877_v8 }
 0x155   : > { %v3928_v24 = vpop.f32.mrb[2].mxu1 }
 0x156   : > { %v3930_v30 = vpop.f32.mrb[3].mxu1 }
 0x159   : > { %v3932_v31 = vpop.f32.mrb[4].mxu1 }
 0x15a   : > { %v3270_v2 = vpop.eup %3269  ;;  %v3934_v34 = vpop.f32.mrb[5].mxu1 }
 0x15b   : > { %v652_v3 = vadd.f32 1.0, %v3270_v2  ;;  %v3272_v6 = vpop.eup %3271  ;;  %v579_v2 = vadd.f32 %v3875_v63, %v3877_v8 }
 0x15c   : > { %v653_v9 = vadd.f32 1.0, %v3272_v6 }
 0x15d   : > { %3273 = vrcp.f32 %v652_v3  ;;  %v3936_v35 = vpop.f32.mrb[6].mxu1 }
 0x15e   : > { %3275 = vrcp.f32 %v653_v9  ;;  %v3938_v37 = vpop.f32.mrb[7].mxu1 }
 0x167   : > { %v3274_v13 = vpop.eup %3273 }
 0x168   : > { %v658_v14 = vmul.f32 %v3274_v13, %v3884_v10  ;;  %v3276_v18 = vpop.eup %3275 }
 0x169   : > { %v661_v19 = vsub.f32 1.0, %v3276_v18 }
 0x16a   : > { %v659_v17 = vadd.f32 %v658_v14, %v574_v11 }
 0x16c   : > { %3277 = vtanh.f32 %v659_v17 }
 0x176   : > { %v3278_v21 = vpop.eup %3277 }
 0x177   : > { %v3888_v23 = vmul.f32 %v3278_v21, %v661_v19 }
 0x179   : > { %663 = vst [vmem:[#allocation2] sm:$0xff] %v3888_v23  ;;  %777 = vmatmul.mubr.f32.vlgmr.msra.gmra.mrb[2].mxu0 %v3888_v23  ;;  %2518 = vmatmul.mubr.f32.vlgmr.msra.gmra.mrb[8].mxu1 %v3888_v23 }
 0x17a   : > { %2853 = vmatpush1.bf16.msra.mxu0 %v3737_v26  ;;  %2884 = vmatpush3.bf16.msra.mxu1 %v3742_v29 }
 0x17b   : > { %2855 = vmatprep.subr.bf16.mxu0 %v3748_v32  ;;  %2885 = vmatprep.subr.bf16.mxu1 %v3454_v28 }
 0x17c   : > { %993 = vmatprep.mubr.f32.mxu0 %v3453_v15  ;;  %2552 = vmatprep.mubr.msk.f32.mxu1 %vm3455_vm0, %v3453_v15 }
 0x17e   : > { %2857 = vmatpush1.bf16.msra.mxu0 %v3753_v36  ;;  %2887 = vmatpush3.bf16.msra.mxu1 %v3758_v38 }
 0x17f   : > { %2859 = vmatprep.subr.bf16.mxu0 %v3764_v41  ;;  %2888 = vmatprep.subr.bf16.mxu1 %v3454_v28 }
 0x182   : > { %2861 = vmatpush1.bf16.msra.mxu0 %v3769_v46  ;;  %2890 = vmatpush3.bf16.msra.mxu1 %v3774_v48 }
 0x183   : > { %2863 = vmatprep.subr.bf16.mxu0 %v3781_v51  ;;  %2891 = vmatprep.subr.bf16.mxu1 %v3454_v28 }
 0x186   : > { %2865 = vmatpush1.bf16.msra.mxu0 %v3786_v56  ;;  %2893 = vmatpush3.bf16.msra.mxu1 %v3791_v58 }
 0x187   : > { %2867 = vmatprep.subr.bf16.mxu0 %v3798_v61  ;;  %2894 = vmatprep.subr.bf16.mxu1 %v3454_v28 }
 0x18a   : > { %2869 = vmatpush1.bf16.msra.mxu0 %v3802_v1  ;;  %2896 = vmatpush3.bf16.msra.mxu1 %v3808_v4 }
 0x18b   : > { %2871 = vmatprep.subr.bf16.mxu0 %v3815_v7  ;;  %2897 = vmatprep.subr.bf16.mxu1 %v3454_v28 }
 0x18e   : > { %2873 = vmatpush1.bf16.msra.mxu0 %v3820_v12  ;;  %2899 = vmatpush3.bf16.msra.mxu1 %v3826_v16 }
 0x18f   : > { %2875 = vmatprep.subr.bf16.mxu0 %v3832_v20  ;;  %2900 = vmatprep.subr.bf16.mxu1 %v3454_v28 }
 0x192   : > { %2877 = vmatpush1.bf16.msra.mxu0 %v3838_v25  ;;  %2902 = vmatpush3.bf16.msra.mxu1 %v3840_v27 }
 0x193   : > { %2879 = vmatprep.subr.bf16.mxu0 %v3845_v33  ;;  %2903 = vmatprep.subr.bf16.mxu1 %v3454_v28 }
 0x196   : > { %2881 = vmatpush1.bf16.msra.mxu0 %v3854_v42  ;;  %2905 = vmatpush3.bf16.msra.mxu1 %v3857_v43 }
 0x197   : > { %2907 = vmatprep.subr.bf16.mxu0 %v3732_v22  ;;  %2938 = vmatprep.subr.bf16.mxu1 %v3454_v28 }
 0x24c   : > { %v778_v39 = vpop.f32.mrb[2].mxu0  ;;  %v849_v40 = vpop.f32.mrb[8].mxu1 }
 0x24d   : > { %v3186_v44 = vadd.f32 %v778_v39, %v3869_v52  ;;  %v780_v45 = vpop.f32.mrb[3].mxu0  ;;  %v2519_v47 = vpop.f32.mrb[9].mxu1  ;;  %v871_v62 = vadd.f32 %v3884_v10, %v849_v40 }
 0x24e   : > { %v3187_v50 = vadd.f32 %v780_v45, %v3871_v54 }
 0x24f   : > { %v2281_v49 = vmul.f32 -1.442695, %v3186_v44 }
 0x250   : > { %v2282_v53 = vmul.f32 -1.442695, %v3187_v50 }
 0x251   : > { %3279 = vpow2.f32 %v2281_v49 }
 0x252   : > { %3281 = vpow2.f32 %v2282_v53 }
 0x25b   : > { %v3280_v55 = vpop.eup %3279 }
 0x25c   : > { %v865_v57 = vadd.f32 1.0, %v3280_v55  ;;  %v3282_v59 = vpop.eup %3281  ;;  %v584_v55 = vadd.f32 %v3930_v30, %v3877_v8  ;;  %v1536_v30 = vld [vmem:[%s3634_s6 + $0x20] sm:$0xff] }
 0x25d   : > { %v866_v60 = vadd.f32 1.0, %v3282_v59 }
 0x25e   : > { %3283 = vrcp.f32 %v865_v57 }
 0x25f   : > { %3285 = vrcp.f32 %v866_v60 }
 0x268   : > { %v3284_v0 = vpop.eup %3283 }
 0x269   : > { %v872_v3 = vmul.f32 %v3284_v0, %v871_v62  ;;  %v3286_v6 = vpop.eup %3285 }
 0x26a   : > { %v875_v9 = vsub.f32 1.0, %v3286_v6  ;;  %v877_v14 = vmul.f32 %v3286_v6, %v3888_v23 }
 0x26b   : > { %v873_v5 = vadd.f32 %v872_v3, %v579_v2 }
 0x26d   : > { %3287 = vtanh.f32 %v873_v5 }
 0x277   : > { %v3288_v11 = vpop.eup %3287 }
 0x278   : > { %v876_v13 = vmul.f32 %v3288_v11, %v875_v9  ;;  %v1532_v9 = vld [vmem:[%s3634_s6] sm:$0xff]  ;;  %v1535_v11 = vld [vmem:[%s3634_s6 + $0x18] sm:$0xff] }
 0x27a   : > { %v3946_v17 = vadd.f32 %v877_v14, %v876_v13  ;;  %v1534_v13 = vld [vmem:[%s3634_s6 + $0x10] sm:$0xff]  ;;  %v4052_v14 = vpack.c.bf16 %v1535_v11, %v1532_v9  ;;  %v1572_v9 = vld [vmem:[%s3634_s6 + $0x140] sm:$0xff] }
 0x27b   : > { %v1568_v11 = vld [vmem:[%s3634_s6 + $0x120] sm:$0xff] }
 0x27c   : > { %880 = vst [vmem:[#allocation2 + $0x8] sm:$0xff] %v3946_v17  ;;  %994 = vmatmul.mubr.f32.vlgmr.msra.gmra.mrb[4].mxu0 %v3946_v17  ;;  %2553 = vmatmul.mubr.f32.vlgmr.msra.gmra.mrb[10].mxu1 %v3946_v17 }
 0x27d   : > { %2909 = vmatpush1.bf16.msra.mxu0 %v3737_v26  ;;  %2940 = vmatpush3.bf16.msra.mxu1 %v3742_v29 }
 0x27e   : > { %2911 = vmatprep.subr.bf16.mxu0 %v3748_v32  ;;  %2941 = vmatprep.subr.bf16.mxu1 %v3454_v28 }
 0x27f   : > { %1210 = vmatprep.mubr.f32.mxu0 %v3453_v15  ;;  %2587 = vmatprep.mubr.msk.f32.mxu1 %vm3455_vm0, %v3453_v15 }
 0x281   : > { %2913 = vmatpush1.bf16.msra.mxu0 %v3753_v36  ;;  %2943 = vmatpush3.bf16.msra.mxu1 %v3758_v38 }
 0x282   : > { %2915 = vmatprep.subr.bf16.mxu0 %v3764_v41  ;;  %2944 = vmatprep.subr.bf16.mxu1 %v3454_v28 }
 0x285   : > { %2917 = vmatpush1.bf16.msra.mxu0 %v3769_v46  ;;  %2946 = vmatpush3.bf16.msra.mxu1 %v3774_v48 }
 0x286   : > { %2919 = vmatprep.subr.bf16.mxu0 %v3781_v51  ;;  %2947 = vmatprep.subr.bf16.mxu1 %v3454_v28 }
 0x289   : > { %2921 = vmatpush1.bf16.msra.mxu0 %v3786_v56  ;;  %2949 = vmatpush3.bf16.msra.mxu1 %v3791_v58 }
 0x28a   : > { %2923 = vmatprep.subr.bf16.mxu0 %v3798_v61  ;;  %2950 = vmatprep.subr.bf16.mxu1 %v3454_v28 }
 0x28d   : > { %2925 = vmatpush1.bf16.msra.mxu0 %v3802_v1  ;;  %2952 = vmatpush3.bf16.msra.mxu1 %v3808_v4 }
 0x28e   : > { %2927 = vmatprep.subr.bf16.mxu0 %v3815_v7  ;;  %2953 = vmatprep.subr.bf16.mxu1 %v3454_v28 }
 0x291   : > { %2929 = vmatpush1.bf16.msra.mxu0 %v3820_v12  ;;  %2955 = vmatpush3.bf16.msra.mxu1 %v3826_v16 }
 0x292   : > { %2931 = vmatprep.subr.bf16.mxu0 %v3832_v20  ;;  %2956 = vmatprep.subr.bf16.mxu1 %v3454_v28 }
 0x295   : > { %2933 = vmatpush1.bf16.msra.mxu0 %v3838_v25  ;;  %2958 = vmatpush3.bf16.msra.mxu1 %v3840_v27 }
 0x296   : > { %2935 = vmatprep.subr.bf16.mxu0 %v3845_v33  ;;  %2959 = vmatprep.subr.bf16.mxu1 %v3454_v28 }
 0x299   : > { %2937 = vmatpush1.bf16.msra.mxu0 %v3854_v42  ;;  %2961 = vmatpush3.bf16.msra.mxu1 %v3857_v43 }
 0x29a   : > { %2963 = vmatprep.subr.bf16.mxu0 %v3732_v22  ;;  %2994 = vmatprep.subr.bf16.mxu1 %v3454_v28 }
 0x34f   : > { %v995_v63 = vpop.f32.mrb[4].mxu0  ;;  %v1066_v18 = vpop.f32.mrb[10].mxu1 }
 0x350   : > { %v3188_v19 = vadd.f32 %v995_v63, %v3869_v52  ;;  %v997_v21 = vpop.f32.mrb[5].mxu0  ;;  %v2554_v23 = vpop.f32.mrb[11].mxu1  ;;  %v1088_v22 = vadd.f32 %v3884_v10, %v1066_v18  ;;  %v1539_v18 = vld [vmem:[%s3634_s6 + $0x38] sm:$0xff] }
 0x351   : > { %v3189_v40 = vadd.f32 %v997_v21, %v3871_v54  ;;  %v1538_v23 = vld [vmem:[%s3634_s6 + $0x30] sm:$0xff] }
 0x352   : > { %v2283_v39 = vmul.f32 -1.442695, %v3188_v19  ;;  %v1542_v19 = vld [vmem:[%s3634_s6 + $0x50] sm:$0xff] }
 0x353   : > { %v2284_v44 = vmul.f32 -1.442695, %v3189_v40  ;;  %v4062_v21 = vpack.c.bf16 %v1542_v19, %v1539_v18  ;;  %v1540_v40 = vld [vmem:[%s3634_s6 + $0x40] sm:$0xff]  ;;  %v1570_v18 = vld [vmem:[%s3634_s6 + $0x130] sm:$0xff]  ;;  %v1573_v19 = vld [vmem:[%s3634_s6 + $0x148] sm:$0xff] }
 0x354   : > { %3289 = vpow2.f32 %v2283_v39  ;;  %v1541_v39 = vld [vmem:[%s3634_s6 + $0x48] sm:$0xff] }
 0x355   : > { %3291 = vpow2.f32 %v2284_v44  ;;  %v4068_v44 = vpack.c.bf16 %v1541_v39, %v1538_v23  ;;  %v1575_v39 = vld [vmem:[%s3634_s6 + $0x158] sm:$0xff] }
 0x35e   : > { %v3290_v45 = vpop.eup %3289 }
 0x35f   : > { %v1082_v47 = vadd.f32 1.0, %v3290_v45  ;;  %v3292_v49 = vpop.eup %3291  ;;  %v1543_v45 = vld [vmem:[%s3634_s6 + $0x58] sm:$0xff] }
 0x360   : > { %v1083_v50 = vadd.f32 1.0, %v3292_v49  ;;  %v1545_v49 = vld [vmem:[%s3634_s6 + $0x68] sm:$0xff] }
 0x361   : > { %3293 = vrcp.f32 %v1082_v47  ;;  %v4072_v47 = vpack.c.bf16 %v1543_v45, %v1540_v40  ;;  %v1578_v40 = vld [vmem:[%s3634_s6 + $0x170] sm:$0xff]  ;;  %v4153_v45 = vpack.c.bf16 %v1573_v19, %v1570_v18 }
 0x362   : > { %3295 = vrcp.f32 %v1083_v50  ;;  %v1548_v50 = vld [vmem:[%s3634_s6 + $0x80] sm:$0xff] }
 0x36b   : > { %v3294_v53 = vpop.eup %3293 }
 0x36c   : > { %v1089_v57 = vmul.f32 %v3294_v53, %v1088_v22  ;;  %v3296_v60 = vpop.eup %3295  ;;  %v4078_v22 = vpack.c.bf16 %v1548_v50, %v1545_v49  ;;  %v1544_v53 = vld [vmem:[%s3634_s6 + $0x60] sm:$0xff]  ;;  %v4155_v49 = vpack.c.bf16 %v1578_v40, %v1575_v39  ;;  %v1574_v50 = vld [vmem:[%s3634_s6 + $0x150] sm:$0xff] }
 0x36d   : > { %v1092_v62 = vsub.f32 1.0, %v3296_v60  ;;  %v1094_v3 = vmul.f32 %v3296_v60, %v3946_v17  ;;  %v1537_v17 = vld [vmem:[%s3634_s6 + $0x28] sm:$0xff] }
 0x36e   : > { %v1090_v59 = vadd.f32 %v1089_v57, %v584_v55  ;;  %v4056_v63 = vpack.c.bf16 %v1537_v17, %v1534_v13  ;;  %v1547_v55 = vld [vmem:[%s3634_s6 + $0x78] sm:$0xff]  ;;  %v1546_v57 = vld [vmem:[%s3634_s6 + $0x70] sm:$0xff]  ;;  %v1549_v60 = vld [vmem:[%s3634_s6 + $0x88] sm:$0xff] }
 0x36f   : > { %v1571_v17 = vld [vmem:[%s3634_s6 + $0x138] sm:$0xff] }
 0x370   : > { %3297 = vtanh.f32 %v1090_v59  ;;  %v4084_v59 = vpack.c.bf16 %v1547_v55, %v1544_v53  ;;  %v4147_v23 = vpack.c.bf16 %v1571_v17, %v1568_v11  ;;  %v1577_v53 = vld [vmem:[%s3634_s6 + $0x168] sm:$0xff]  ;;  %v1576_v55 = vld [vmem:[%s3634_s6 + $0x160] sm:$0xff] }
 0x37a   : > { %v3298_v0 = vpop.eup %3297 }
 0x37b   : > { %v1093_v2 = vmul.f32 %v3298_v0, %v1092_v62  ;;  %v4088_v62 = vpack.c.bf16 %v1549_v60, %v1546_v57  ;;  %v1551_v0 = vld [vmem:[%s3634_s6 + $0x98] sm:$0xff]  ;;  %v4163_v60 = vpack.c.bf16 %v1577_v53, %v1574_v50 }
 0x37c   : > { %v1579_v57 = vld [vmem:[%s3634_s6 + $0x178] sm:$0xff] }
 0x37d   : > { %v3992_v5 = vadd.f32 %v1094_v3, %v1093_v2  ;;  %v1554_v2 = vld [vmem:[%s3634_s6 + $0xb0] sm:$0xff] }
 0x37e   : > { %v4094_v3 = vpack.c.bf16 %v1554_v2, %v1551_v0  ;;  %v4167_v0 = vpack.c.bf16 %v1579_v57, %v1576_v55 }
 0x37f   : > { %1097 = vst [vmem:[#allocation2 + $0x10] sm:$0xff] %v3992_v5  ;;  %1211 = vmatmul.mubr.f32.vlgmr.msra.gmra.mrb[6].mxu0 %v3992_v5  ;;  %2588 = vmatmul.mubr.f32.vlgmr.msra.gmra.mrb[12].mxu1 %v3992_v5 }
 0x380   : > { %2965 = vmatpush1.bf16.msra.mxu0 %v3737_v26  ;;  %2996 = vmatpush3.bf16.msra.mxu1 %v3742_v29 }
 0x381   : > { %2967 = vmatprep.subr.bf16.mxu0 %v3748_v32  ;;  %2997 = vmatprep.subr.bf16.mxu1 %v3454_v28 }
 0x382   : > { %1427 = vmatprep.mubr.f32.mxu0 %v3453_v15  ;;  %2622 = vmatprep.mubr.msk.f32.mxu1 %vm3455_vm0, %v3453_v15 }
 0x384   : > { %2969 = vmatpush1.bf16.msra.mxu0 %v3753_v36  ;;  %2999 = vmatpush3.bf16.msra.mxu1 %v3758_v38 }
 0x385   : > { %2971 = vmatprep.subr.bf16.mxu0 %v3764_v41  ;;  %3000 = vmatprep.subr.bf16.mxu1 %v3454_v28 }
 0x388   : > { %2973 = vmatpush1.bf16.msra.mxu0 %v3769_v46  ;;  %3002 = vmatpush3.bf16.msra.mxu1 %v3774_v48 }
 0x389   : > { %2975 = vmatprep.subr.bf16.mxu0 %v3781_v51  ;;  %3003 = vmatprep.subr.bf16.mxu1 %v3454_v28 }
 0x38c   : > { %2977 = vmatpush1.bf16.msra.mxu0 %v3786_v56  ;;  %3005 = vmatpush3.bf16.msra.mxu1 %v3791_v58 }
 0x38d   : > { %2979 = vmatprep.subr.bf16.mxu0 %v3798_v61  ;;  %3006 = vmatprep.subr.bf16.mxu1 %v3454_v28 }
 0x390   : > { %2981 = vmatpush1.bf16.msra.mxu0 %v3802_v1  ;;  %3008 = vmatpush3.bf16.msra.mxu1 %v3808_v4 }
 0x391   : > { %2983 = vmatprep.subr.bf16.mxu0 %v3815_v7  ;;  %3009 = vmatprep.subr.bf16.mxu1 %v3454_v28  ;;  %v589_v7 = vadd.f32 %v3928_v24, %v3877_v8  ;;  %v1533_v24 = vld [vmem:[%s3634_s6 + $0x8] sm:$0xff] }
 0x392   : > { %v4047_v6 = vpack.c.bf16 %v1536_v30, %v1533_v24  ;;  %v1569_v30 = vld [vmem:[%s3634_s6 + $0x128] sm:$0xff] }
 0x393   : > { %v4141_v13 = vpack.c.bf16 %v1572_v9, %v1569_v30 }
 0x394   : > { %2985 = vmatpush1.bf16.msra.mxu0 %v3820_v12  ;;  %3011 = vmatpush3.bf16.msra.mxu1 %v3826_v16 }
 0x395   : > { %2987 = vmatprep.subr.bf16.mxu0 %v3832_v20  ;;  %3012 = vmatprep.subr.bf16.mxu1 %v3454_v28 }
 0x398   : > { %2989 = vmatpush1.bf16.msra.mxu0 %v3838_v25  ;;  %3014 = vmatpush3.bf16.msra.mxu1 %v3840_v27 }
 0x399   : > { %2991 = vmatprep.subr.bf16.mxu0 %v3845_v33  ;;  %3015 = vmatprep.subr.bf16.mxu1 %v3454_v28 }
 0x39c   : > { %2993 = vmatpush1.bf16.msra.mxu0 %v3854_v42  ;;  %3017 = vmatpush3.bf16.msra.mxu1 %v3857_v43 }
 0x39d   : > { %3050 = vmatprep.subr.bf16.mxu1 %v3454_v28  ;;  %3019 = vmatprep.subr.bf16.mxu0 %v4047_v6 }
 0x452   : > { %v1212_v26 = vpop.f32.mrb[6].mxu0  ;;  %v1283_v29 = vpop.f32.mrb[12].mxu1 }
 0x453   : > { %v3190_v32 = vadd.f32 %v1212_v26, %v3869_v52  ;;  %v1214_v36 = vpop.f32.mrb[7].mxu0  ;;  %v2589_v38 = vpop.f32.mrb[13].mxu1  ;;  %v1305_v1 = vadd.f32 %v3884_v10, %v1283_v29  ;;  %v1553_v26 = vld [vmem:[%s3634_s6 + $0xa8] sm:$0xff]  ;;  %v1552_v29 = vld [vmem:[%s3634_s6 + $0xa0] sm:$0xff] }
 0x454   : > { %v3191_v46 = vadd.f32 %v1214_v36, %v3871_v54  ;;  %v1555_v36 = vld [vmem:[%s3634_s6 + $0xb8] sm:$0xff] }
 0x455   : > { %v2285_v41 = vmul.f32 -1.442695, %v3190_v32  ;;  %v4104_v38 = vpack.c.bf16 %v1555_v36, %v1552_v29 }
 0x456   : > { %v2286_v48 = vmul.f32 -1.442695, %v3191_v46  ;;  %v1560_v46 = vld [vmem:[%s3634_s6 + $0xe0] sm:$0xff] }
 0x457   : > { %3299 = vpow2.f32 %v2285_v41  ;;  %v1557_v41 = vld [vmem:[%s3634_s6 + $0xc8] sm:$0xff] }
 0x458   : > { %3301 = vpow2.f32 %v2286_v48  ;;  %v4110_v48 = vpack.c.bf16 %v1560_v46, %v1557_v41 }
 0x461   : > { %v3300_v51 = vpop.eup %3299 }
 0x462   : > { %v1299_v56 = vadd.f32 1.0, %v3300_v51  ;;  %v3302_v58 = vpop.eup %3301  ;;  %v1556_v51 = vld [vmem:[%s3634_s6 + $0xc0] sm:$0xff] }
 0x463   : > { %v1300_v61 = vadd.f32 1.0, %v3302_v58  ;;  %v1558_v58 = vld [vmem:[%s3634_s6 + $0xd0] sm:$0xff] }
 0x464   : > { %3303 = vrcp.f32 %v1299_v56  ;;  %v1559_v56 = vld [vmem:[%s3634_s6 + $0xd8] sm:$0xff] }
 0x465   : > { %3305 = vrcp.f32 %v1300_v61  ;;  %v4116_v61 = vpack.c.bf16 %v1559_v56, %v1556_v51 }
 0x46e   : > { %v3304_v4 = vpop.eup %3303 }
 0x46f   : > { %v1306_v12 = vmul.f32 %v3304_v4, %v1305_v1  ;;  %v3306_v20 = vpop.eup %3305  ;;  %v1561_v1 = vld [vmem:[%s3634_s6 + $0xe8] sm:$0xff] }
 0x470   : > { %v1309_v25 = vsub.f32 1.0, %v3306_v20  ;;  %v1311_v42 = vmul.f32 %v3306_v20, %v3992_v5  ;;  %v1550_v5 = vld [vmem:[%s3634_s6 + $0x90] sm:$0xff]  ;;  %v4120_v4 = vpack.c.bf16 %v1561_v1, %v1558_v58 }
 0x471   : > { %v1307_v16 = vadd.f32 %v1306_v12, %v589_v7  ;;  %v4100_v32 = vpack.c.bf16 %v1553_v26, %v1550_v5  ;;  %v1563_v7 = vld [vmem:[%s3634_s6 + $0xf8] sm:$0xff]  ;;  %v1566_v12 = vld [vmem:[%s3634_s6 + $0x110] sm:$0xff] }
 0x472   : > { %v4127_v20 = vpack.c.bf16 %v1566_v12, %v1563_v7 }
 0x473   : > { %3307 = vtanh.f32 %v1307_v16  ;;  %v1562_v16 = vld [vmem:[%s3634_s6 + $0xf0] sm:$0xff] }
 0x47d   : > { %v3308_v27 = vpop.eup %3307 }
 0x47e   : > { %v1310_v33 = vmul.f32 %v3308_v27, %v1309_v25  ;;  %v1565_v25 = vld [vmem:[%s3634_s6 + $0x108] sm:$0xff]  ;;  %v1564_v27 = vld [vmem:[%s3634_s6 + $0x100] sm:$0xff] }
 0x480   : > { %v4037_v43 = vadd.f32 %v1311_v42, %v1310_v33  ;;  %v1567_v33 = vld [vmem:[%s3634_s6 + $0x118] sm:$0xff]  ;;  %v4133_v42 = vpack.c.bf16 %v1565_v25, %v1562_v16  ;;  %v594_v25 = vadd.f32 %v3934_v34, %v3877_v8 }
 0x481   : > { %v4135_v24 = vpack.c.bf16 %v1567_v33, %v1564_v27 }
 0x482   : > { %1314 = vst [vmem:[#allocation2 + $0x18] sm:$0xff] %v4037_v43  ;;  %1428 = vmatmul.mubr.f32.vlgmr.msra.gmra.mrb[8].mxu0 %v4037_v43  ;;  %2623 = vmatmul.mubr.f32.vlgmr.msra.gmra.mrb[14].mxu1 %v4037_v43 }
 0x483   : > { %1644 = vmatprep.mubr.f32.mxu0 %v3453_v15  ;;  %2657 = vmatprep.mubr.msk.f32.mxu1 %vm3455_vm0, %v3453_v15 }
 0x484   : > { %3021 = vmatpush1.bf16.msra.mxu0 %v4052_v14  ;;  %3052 = vmatpush3.bf16.msra.mxu1 %v4056_v63 }
 0x485   : > { %3053 = vmatprep.subr.bf16.mxu1 %v3454_v28  ;;  %3023 = vmatprep.subr.bf16.mxu0 %v4062_v21 }
 0x488   : > { %3025 = vmatpush1.bf16.msra.mxu0 %v4068_v44  ;;  %3055 = vmatpush3.bf16.msra.mxu1 %v4072_v47 }
 0x489   : > { %3056 = vmatprep.subr.bf16.mxu1 %v3454_v28  ;;  %3027 = vmatprep.subr.bf16.mxu0 %v4078_v22 }
 0x48c   : > { %3029 = vmatpush1.bf16.msra.mxu0 %v4084_v59  ;;  %3058 = vmatpush3.bf16.msra.mxu1 %v4088_v62 }
 0x48d   : > { %3059 = vmatprep.subr.bf16.mxu1 %v3454_v28  ;;  %3031 = vmatprep.subr.bf16.mxu0 %v4094_v3 }
 0x490   : > { %3033 = vmatpush1.bf16.msra.mxu0 %v4100_v32  ;;  %3061 = vmatpush3.bf16.msra.mxu1 %v4104_v38 }
 0x491   : > { %3062 = vmatprep.subr.bf16.mxu1 %v3454_v28  ;;  %3035 = vmatprep.subr.bf16.mxu0 %v4110_v48 }
 0x494   : > { %3037 = vmatpush1.bf16.msra.mxu0 %v4116_v61  ;;  %3064 = vmatpush3.bf16.msra.mxu1 %v4120_v4 }
 0x495   : > { %3065 = vmatprep.subr.bf16.mxu1 %v3454_v28  ;;  %3039 = vmatprep.subr.bf16.mxu0 %v4127_v20 }
 0x498   : > { %3041 = vmatpush1.bf16.msra.mxu0 %v4133_v42  ;;  %3067 = vmatpush3.bf16.msra.mxu1 %v4135_v24 }
 0x499   : > { %3043 = vmatprep.subr.bf16.mxu0 %v4141_v13  ;;  %3068 = vmatprep.subr.bf16.mxu1 %v3454_v28 }
 0x49c   : > { %3045 = vmatpush1.bf16.msra.mxu0 %v4147_v23  ;;  %3070 = vmatpush3.bf16.msra.mxu1 %v4153_v45 }
 0x49d   : > { %3047 = vmatprep.subr.bf16.mxu0 %v4155_v49  ;;  %3071 = vmatprep.subr.bf16.mxu1 %v3454_v28 }
 0x4a0   : > { %3049 = vmatpush1.bf16.msra.mxu0 %v4163_v60  ;;  %3073 = vmatpush3.bf16.msra.mxu1 %v4167_v0 }
 0x4a1   : > { %3075 = vmatprep.subr.bf16.mxu0 %v4047_v6  ;;  %3106 = vmatprep.subr.bf16.mxu1 %v3454_v28 }
 0x555   : > { %v1429_v2 = vpop.f32.mrb[8].mxu0  ;;  %v1500_v5 = vpop.f32.mrb[14].mxu1 }
 0x556   : > { %v3192_v26 = vadd.f32 %v1429_v2, %v3869_v52  ;;  %v1431_v29 = vpop.f32.mrb[9].mxu0  ;;  %v2624_v36 = vpop.f32.mrb[15].mxu1  ;;  %v1522_v12 = vadd.f32 %v3884_v10, %v1500_v5 }
 0x557   : > { %v3193_v46 = vadd.f32 %v1431_v29, %v3871_v54 }
 0x558   : > { %v2287_v41 = vmul.f32 -1.442695, %v3192_v26 }
 0x559   : > { %v2288_v51 = vmul.f32 -1.442695, %v3193_v46 }
 0x55a   : > { %3309 = vpow2.f32 %v2287_v41  ;;  %v599_v41 = vadd.f32 %v3932_v31, %v3877_v8 }
 0x55b   : > { %3311 = vpow2.f32 %v2288_v51 }
 0x564   : > { %v3310_v56 = vpop.eup %3309 }
 0x565   : > { %v1516_v58 = vadd.f32 1.0, %v3310_v56  ;;  %v3312_v1 = vpop.eup %3311 }
 0x566   : > { %v1517_v7 = vadd.f32 1.0, %v3312_v1 }
 0x567   : > { %3313 = vrcp.f32 %v1516_v58 }
 0x568   : > { %3315 = vrcp.f32 %v1517_v7 }
 0x571   : > { %v3314_v16 = vpop.eup %3313 }
 0x572   : > { %v1523_v27 = vmul.f32 %v3314_v16, %v1522_v12  ;;  %v3316_v30 = vpop.eup %3315 }
 0x573   : > { %v1526_v9 = vsub.f32 1.0, %v3316_v30  ;;  %v1528_v18 = vmul.f32 %v3316_v30, %v4037_v43 }
 0x574   : > { %v1524_v33 = vadd.f32 %v1523_v27, %v594_v25 }
 0x576   : > { %3317 = vtanh.f32 %v1524_v33 }
 0x580   : > { %v3318_v11 = vpop.eup %3317 }
 0x581   : > { %v1527_v17 = vmul.f32 %v3318_v11, %v1526_v9 }
 0x583   : > { %v4180_v19 = vadd.f32 %v1528_v18, %v1527_v17 }
 0x585   : > { %1531 = vst [vmem:[#allocation2 + $0x20] sm:$0xff] %v4180_v19  ;;  %1645 = vmatmul.mubr.f32.vlgmr.msra.gmra.mrb[10].mxu0 %v4180_v19  ;;  %2658 = vmatmul.mubr.f32.vlgmr.msra.gmra.mrb[16].mxu1 %v4180_v19 }
 0x586   : > { %3077 = vmatpush1.bf16.msra.mxu0 %v4052_v14  ;;  %3108 = vmatpush3.bf16.msra.mxu1 %v4056_v63 }
 0x587   : > { %3079 = vmatprep.subr.bf16.mxu0 %v4062_v21  ;;  %3109 = vmatprep.subr.bf16.mxu1 %v3454_v28 }
 0x588   : > { %1861 = vmatprep.mubr.f32.mxu0 %v3453_v15  ;;  %2692 = vmatprep.mubr.msk.f32.mxu1 %vm3455_vm0, %v3453_v15 }
 0x58a   : > { %3081 = vmatpush1.bf16.msra.mxu0 %v4068_v44  ;;  %3111 = vmatpush3.bf16.msra.mxu1 %v4072_v47 }
 0x58b   : > { %3083 = vmatprep.subr.bf16.mxu0 %v4078_v22  ;;  %3112 = vmatprep.subr.bf16.mxu1 %v3454_v28 }
 0x58e   : > { %3085 = vmatpush1.bf16.msra.mxu0 %v4084_v59  ;;  %3114 = vmatpush3.bf16.msra.mxu1 %v4088_v62 }
 0x58f   : > { %3087 = vmatprep.subr.bf16.mxu0 %v4094_v3  ;;  %3115 = vmatprep.subr.bf16.mxu1 %v3454_v28 }
 0x592   : > { %3089 = vmatpush1.bf16.msra.mxu0 %v4100_v32  ;;  %3117 = vmatpush3.bf16.msra.mxu1 %v4104_v38 }
 0x593   : > { %3091 = vmatprep.subr.bf16.mxu0 %v4110_v48  ;;  %3118 = vmatprep.subr.bf16.mxu1 %v3454_v28 }
 0x596   : > { %3093 = vmatpush1.bf16.msra.mxu0 %v4116_v61  ;;  %3120 = vmatpush3.bf16.msra.mxu1 %v4120_v4 }
 0x597   : > { %3095 = vmatprep.subr.bf16.mxu0 %v4127_v20  ;;  %3121 = vmatprep.subr.bf16.mxu1 %v3454_v28 }
 0x59a   : > { %3097 = vmatpush1.bf16.msra.mxu0 %v4133_v42  ;;  %3123 = vmatpush3.bf16.msra.mxu1 %v4135_v24 }
 0x59b   : > { %3099 = vmatprep.subr.bf16.mxu0 %v4141_v13  ;;  %3124 = vmatprep.subr.bf16.mxu1 %v3454_v28 }
 0x59e   : > { %3101 = vmatpush1.bf16.msra.mxu0 %v4147_v23  ;;  %3126 = vmatpush3.bf16.msra.mxu1 %v4153_v45 }
 0x59f   : > { %3103 = vmatprep.subr.bf16.mxu0 %v4155_v49  ;;  %3127 = vmatprep.subr.bf16.mxu1 %v3454_v28 }
 0x5a2   : > { %3105 = vmatpush1.bf16.msra.mxu0 %v4163_v60  ;;  %3129 = vmatpush3.bf16.msra.mxu1 %v4167_v0 }
 0x5a3   : > { %3131 = vmatprep.subr.bf16.mxu0 %v4047_v6  ;;  %3162 = vmatprep.subr.bf16.mxu1 %v3454_v28 }
 0x658   : > { %v1646_v34 = vpop.f32.mrb[10].mxu0  ;;  %v1717_v43 = vpop.f32.mrb[16].mxu1 }
 0x659   : > { %v3194_v39 = vadd.f32 %v1646_v34, %v3869_v52  ;;  %v1648_v40 = vpop.f32.mrb[11].mxu0  ;;  %v2659_v50 = vpop.f32.mrb[17].mxu1  ;;  %v1739_v6 = vadd.f32 %v3884_v10, %v1717_v43  ;;  %v609_v43 = vadd.f32 %v3936_v35, %v3877_v8 }
 0x65a   : > { %v3195_v55 = vadd.f32 %v1648_v40, %v3871_v54 }
 0x65b   : > { %v2289_v53 = vmul.f32 -1.442695, %v3194_v39 }
 0x65c   : > { %v2290_v57 = vmul.f32 -1.442695, %v3195_v55 }
 0x65d   : > { %3319 = vpow2.f32 %v2289_v53 }
 0x65e   : > { %3321 = vpow2.f32 %v2290_v57 }
 0x667   : > { %v3320_v2 = vpop.eup %3319 }
 0x668   : > { %v1733_v5 = vadd.f32 1.0, %v3320_v2  ;;  %v3322_v26 = vpop.eup %3321 }
 0x669   : > { %v1734_v29 = vadd.f32 1.0, %v3322_v26 }
 0x66a   : > { %3323 = vrcp.f32 %v1733_v5 }
 0x66b   : > { %3325 = vrcp.f32 %v1734_v29 }
 0x674   : > { %v3324_v36 = vpop.eup %3323 }
 0x675   : > { %v1740_v46 = vmul.f32 %v3324_v36, %v1739_v6  ;;  %v3326_v56 = vpop.eup %3325 }
 0x676   : > { %v1743_v58 = vsub.f32 1.0, %v3326_v56  ;;  %v1745_v12 = vmul.f32 %v3326_v56, %v4180_v19 }
 0x677   : > { %v1741_v51 = vadd.f32 %v1740_v46, %v599_v41 }
 0x679   : > { %3327 = vtanh.f32 %v1741_v51 }
 0x683   : > { %v3328_v1 = vpop.eup %3327 }
 0x684   : > { %v1744_v7 = vmul.f32 %v3328_v1, %v1743_v58 }
 0x686   : > { %v1746_v16 = vadd.f32 %v1745_v12, %v1744_v7 }
 0x688   : > { %1748 = vst [vmem:[#allocation2 + $0x28] sm:$0xff] %v1746_v16  ;;  %1862 = vmatmul.mubr.f32.vlgmr.msra.gmra.mrb[12].mxu0 %v1746_v16  ;;  %2693 = vmatmul.mubr.f32.vlgmr.msra.gmra.mrb[18].mxu1 %v1746_v16 }
 0x689   : > { %3133 = vmatpush1.bf16.msra.mxu0 %v4052_v14  ;;  %3164 = vmatpush3.bf16.msra.mxu1 %v4056_v63 }
 0x68a   : > { %3135 = vmatprep.subr.bf16.mxu0 %v4062_v21  ;;  %3165 = vmatprep.subr.bf16.mxu1 %v3454_v28 }
 0x68b   : > { %2078 = vmatprep.mubr.f32.mxu0 %v3453_v15  ;;  %2727 = vmatprep.mubr.msk.f32.mxu1 %vm3455_vm0, %v3453_v15 }
 0x68d   : > { %3137 = vmatpush1.bf16.msra.mxu0 %v4068_v44  ;;  %3167 = vmatpush3.bf16.msra.mxu1 %v4072_v47 }
 0x68e   : > { %3139 = vmatprep.subr.bf16.mxu0 %v4078_v22  ;;  %3168 = vmatprep.subr.bf16.mxu1 %v3454_v28 }
 0x691   : > { %3141 = vmatpush1.bf16.msra.mxu0 %v4084_v59  ;;  %3170 = vmatpush3.bf16.msra.mxu1 %v4088_v62 }
 0x692   : > { %3143 = vmatprep.subr.bf16.mxu0 %v4094_v3  ;;  %3171 = vmatprep.subr.bf16.mxu1 %v3454_v28 }
 0x695   : > { %3145 = vmatpush1.bf16.msra.mxu0 %v4100_v32  ;;  %3173 = vmatpush3.bf16.msra.mxu1 %v4104_v38 }
 0x696   : > { %3147 = vmatprep.subr.bf16.mxu0 %v4110_v48  ;;  %3174 = vmatprep.subr.bf16.mxu1 %v3454_v28  ;;  %v604_v48 = vadd.f32 %v3938_v37, %v3877_v8 }
 0x699   : > { %3149 = vmatpush1.bf16.msra.mxu0 %v4116_v61  ;;  %3176 = vmatpush3.bf16.msra.mxu1 %v4120_v4 }
 0x69a   : > { %3151 = vmatprep.subr.bf16.mxu0 %v4127_v20  ;;  %3177 = vmatprep.subr.bf16.mxu1 %v3454_v28 }
 0x69d   : > { %3153 = vmatpush1.bf16.msra.mxu0 %v4133_v42  ;;  %3179 = vmatpush3.bf16.msra.mxu1 %v4135_v24 }
 0x69e   : > { %3155 = vmatprep.subr.bf16.mxu0 %v4141_v13  ;;  %3180 = vmatprep.subr.bf16.mxu1 %v3454_v28 }
 0x6a1   : > { %3157 = vmatpush1.bf16.msra.mxu0 %v4147_v23  ;;  %3182 = vmatpush3.bf16.msra.mxu1 %v4153_v45 }
 0x6a2   : > { %3159 = vmatprep.subr.bf16.mxu0 %v4155_v49  ;;  %3183 = vmatprep.subr.bf16.mxu1 %v3454_v28 }
 0x6a5   : > { %3161 = vmatpush1.bf16.msra.mxu0 %v4163_v60  ;;  %3185 = vmatpush3.bf16.msra.mxu1 %v4167_v0 }
 0x75b   : > { %v1863_v15 = vpop.f32.mrb[12].mxu0  ;;  %v1934_v31 = vpop.f32.mrb[18].mxu1 }
 0x75c   : > { %v3196_v14 = vadd.f32 %v1863_v15, %v3869_v52  ;;  %v1865_v63 = vpop.f32.mrb[13].mxu0  ;;  %v2694_v21 = vpop.f32.mrb[19].mxu1  ;;  %v1956_v32 = vadd.f32 %v3884_v10, %v1934_v31 }
 0x75d   : > { %v3197_v47 = vadd.f32 %v1865_v63, %v3871_v54 }
 0x75e   : > { %v2291_v44 = vmul.f32 -1.442695, %v3196_v14 }
 0x75f   : > { %v2292_v22 = vmul.f32 -1.442695, %v3197_v47 }
 0x760   : > { %3329 = vpow2.f32 %v2291_v44 }
 0x761   : > { %3331 = vpow2.f32 %v2292_v22 }
 0x76a   : > { %v3330_v59 = vpop.eup %3329 }
 0x76b   : > { %v1950_v62 = vadd.f32 1.0, %v3330_v59  ;;  %v3332_v28 = vpop.eup %3331 }
 0x76c   : > { %v1951_v3 = vadd.f32 1.0, %v3332_v28 }
 0x76d   : > { %3333 = vrcp.f32 %v1950_v62 }
 0x76e   : > { %3335 = vrcp.f32 %v1951_v3 }
 0x777   : > { %v3334_v38 = vpop.eup %3333 }
 0x778   : > { %v1957_v61 = vmul.f32 %v3334_v38, %v1956_v32  ;;  %v3336_v20 = vpop.eup %3335 }
 0x779   : > { %v1960_v42 = vsub.f32 1.0, %v3336_v20  ;;  %v1962_v23 = vmul.f32 %v3336_v20, %v1746_v16 }
 0x77a   : > { %v1958_v4 = vadd.f32 %v1957_v61, %v604_v48 }
 0x77c   : > { %3337 = vtanh.f32 %v1958_v4 }
 0x786   : > { %v3338_v24 = vpop.eup %3337 }
 0x787   : > { %v1961_v13 = vmul.f32 %v3338_v24, %v1960_v42 }
 0x789   : > { %v1963_v45 = vadd.f32 %v1962_v23, %v1961_v13 }
 0x78b   : > { %1965 = vst [vmem:[#allocation2 + $0x30] sm:$0xff] %v1963_v45  ;;  %2079 = vmatmul.mubr.f32.vlgmr.msra.gmra.mrb[14].mxu0 %v1963_v45  ;;  %2728 = vmatmul.mubr.f32.vlgmr.msra.gmra.mrb[20].mxu1 %v1963_v45 }
 0x85e   : > { %v2080_v49 = vpop.f32.mrb[14].mxu0  ;;  %v2151_v60 = vpop.f32.mrb[20].mxu1 }
 0x85f   : > { %v3198_v0 = vadd.f32 %v2080_v49, %v3869_v52  ;;  %v2082_v25 = vpop.f32.mrb[15].mxu0  ;;  %v2729_v27 = vpop.f32.mrb[21].mxu1  ;;  %v2173_v19 = vadd.f32 %v3884_v10, %v2151_v60 }
 0x860   : > { %v3199_v33 = vadd.f32 %v2082_v25, %v3871_v54 }
 0x861   : > { %v2293_v37 = vmul.f32 -1.442695, %v3198_v0 }
 0x862   : > { %v2294_v30 = vmul.f32 -1.442695, %v3199_v33 }
 0x863   : > { %3339 = vpow2.f32 %v2293_v37 }
 0x864   : > { %3341 = vpow2.f32 %v2294_v30 }
 0x86d   : > { %v3340_v9 = vpop.eup %3339 }
 0x86e   : > { %v2167_v11 = vadd.f32 1.0, %v3340_v9  ;;  %v3342_v17 = vpop.eup %3341 }
 0x86f   : > { %v2168_v18 = vadd.f32 1.0, %v3342_v17 }
 0x870   : > { %3343 = vrcp.f32 %v2167_v11 }
 0x871   : > { %3345 = vrcp.f32 %v2168_v18 }
 0x87a   : > { %v3344_v34 = vpop.eup %3343 }
 0x87b   : > { %v2174_v52 = vmul.f32 %v3344_v34, %v2173_v19  ;;  %v3346_v40 = vpop.eup %3345 }
 0x87c   : > { %v2177_v54 = vsub.f32 1.0, %v3346_v40  ;;  %v2179_v55 = vmul.f32 %v3346_v40, %v1963_v45 }
 0x87d   : > { %v2175_v39 = vadd.f32 %v2174_v52, %v609_v43 }
 0x87f   : > { %3347 = vtanh.f32 %v2175_v39 }
 0x888   : > { %2186 = sbr.rel (%p2295_p3) target bundleno = 2191 (0x88f), region = 56 }
 0x889   : > { %v3348_v50 = vpop.eup %3347 }
 0x88a   : > { %v2178_v53 = vmul.f32 %v3348_v50, %v2177_v54 }
 0x88c   : > { %v2180_v57 = vadd.f32 %v2179_v55, %v2178_v53 }
 0x88e   : > { %2182 = vst [vmem:[#allocation2 + $0x38] sm:$0xff] %v2180_v57  ;;  %2187 = vst [vmem:[%s4291_s5] sm:$0xff] (!%p2295_p3), %v2180_v57 }
 0x88f PF: > { %p18_p6 = scmp.ge.s32.totalorder %s3508_s23, 6   ;;  %s4298_s18 = smov %s3439_s19 }
 0x890   : > { %s4299_s19 = smov %s3443_s20  ;;  %s4300_s20 = smov %s3518_s26 }
 0x891   : > { %s4301_s21 = smov %s3508_s23  ;;  %20 = sbr.rel (!%p18_p6) target bundleno = 5 (0x5), region = 117 }
 0x898   :  { %2199 = vsyncpa [#allocation5], 1 }
 0x899   :  { %2201 = vsyncpa [#allocation5 + $0x1], 1 }
 0x89a   :  { %2202 = vsyncpa [#allocation7], 1 }
 0x89b   :  { %2204 = vsyncpa [#allocation7 + $0x1], 1 }

</bundles_post_ra>
